<compile_context>
chip_gen: v7x
topology: tpu7x:2x2x1
jax: 0.10.0
libtpu: 0.0.40
codegen_flags: <defaults>
</compile_context>

<pallas_src>
import functools

import jax
import jax.numpy as jnp
from jax.experimental import pallas as pl
from jax.experimental.pallas import tpu as pltpu


def _quick_gelu(x):
    # QuickGELU: x * sigmoid(1.702 * x)
    return x * jax.nn.sigmoid(1.702 * x)


# ----------------------------------------------------------------------------
# Single fused kernel.
# Grid axis = tiles of the 1024-dim visual feature space.  Each step computes
# a feature tile (bf16 MXU matmul) and accumulates its contribution to the
# first head linear; the last step runs the remainder of cls_head.
# ----------------------------------------------------------------------------
def _classifier_kernel(x_ref, wv_ref, w0_ref, b0_ref, w1_ref, b1_ref,
                       w2_ref, b2_ref, w3_ref, b3_ref, o_ref, acc_ref):
    j = pl.program_id(0)

    @pl.when(j == 0)
    def _():
        acc_ref[...] = jnp.zeros_like(acc_ref)

    # feature tile: x @ Wv[:, j*tn:(j+1)*tn]   (bf16 inputs, f32 accumulation)
    feats = jnp.dot(x_ref[...].astype(jnp.bfloat16), wv_ref[...],
                    preferred_element_type=jnp.float32)
    # fold directly into the first head linear: acc += feats @ W0[j*tn:(j+1)*tn]
    acc_ref[...] += jnp.dot(feats, w0_ref[...],
                            preferred_element_type=jnp.float32)

    @pl.when(j == pl.num_programs(0) - 1)
    def _():
        h = _quick_gelu(acc_ref[...] + b0_ref[...])
        # TODO(synk): nn.Dropout (train mode) not replicated — identity
        # (eval semantics).
        h = _quick_gelu(jnp.dot(h, w1_ref[...],
                                preferred_element_type=jnp.float32) + b1_ref[...])
        h = _quick_gelu(jnp.dot(h, w2_ref[...],
                                preferred_element_type=jnp.float32) + b2_ref[...])
        o_ref[...] = jnp.dot(h, w3_ref[...],
                             preferred_element_type=jnp.float32) + b3_ref[...]


def classifier_forward(x_pad, wv, w0, b0, w1, b1, w2, b2, w3, b3, *, tn=512):
    bp, k = x_pad.shape
    n_feat = wv.shape[1]
    hid = w0.shape[1]
    n_out = w3.shape[1]
    assert n_feat % tn == 0
    const = lambda j: (0, 0)

    grid_spec = pltpu.PrefetchScalarGridSpec(
        num_scalar_prefetch=0,
        grid=(n_feat // tn,),
        in_specs=[
            pl.BlockSpec((bp, k), const),               # x, VMEM-resident
            pl.BlockSpec((k, tn), lambda j: (0, j)),    # visual weight, pipelined
            pl.BlockSpec((tn, hid), lambda j: (j, 0)),  # 1st head weight, pipelined
            pl.BlockSpec(b0.shape, const),
            pl.BlockSpec(w1.shape, const), pl.BlockSpec(b1.shape, const),
            pl.BlockSpec(w2.shape, const), pl.BlockSpec(b2.shape, const),
            pl.BlockSpec(w3.shape, const), pl.BlockSpec(b3.shape, const),
        ],
        out_specs=pl.BlockSpec((bp, n_out), const),
        scratch_shapes=[pltpu.VMEM((bp, hid), jnp.float32)],
    )
    return pl.pallas_call(
        _classifier_kernel,
        out_shape=jax.ShapeDtypeStruct((bp, n_out), jnp.float32),
        grid_spec=grid_spec,
        compiler_params=pltpu.CompilerParams(
            dimension_semantics=("arbitrary",)),   # reduction over feature tiles
    )(x_pad, wv, w0, b0, w1, b1, w2, b2, w3, b3)


# ----------------------------------------------------------------------------
# Classifier wrapper: parameter setup + weight folding done once at init.
# ----------------------------------------------------------------------------
class ClassifierPallas:
    def __init__(self, key, *, hid_dim=32, height=16, width=16):
        self.hid_dim = hid_dim
        c = 3
        in_feat = c * height * width
        n_feat = 1024      # CLIP RN50 visual output dim
        n_cls = 2

        # 255 * ImageNet stats, as in the PyTorch module
        mean = 255.0 * jnp.array([0.485, 0.456, 0.406], jnp.float32)
        std = 255.0 * jnp.array([0.229, 0.224, 0.225], jnp.float32)

        keys = jax.random.split(key, 10)

        def lin(kw, kb, fan_in, fan_out):
            scale = 1.0 / jnp.sqrt(jnp.float32(fan_in))
            w = jax.random.uniform(kw, (fan_in, fan_out), jnp.float32,
                                   minval=-scale, maxval=scale)
            b = jax.random.uniform(kb, (1, fan_out), jnp.float32,
                                   minval=-scale, maxval=scale)
            return w, b

        # TODO(synk): clip.load(...) loads a pretrained CLIP visual encoder; no
        # in-script equivalent exists, so it is replaced by a deterministic
        # linear projection (flattened NCHW pixels -> 1024 features).
        w_vis, b_vis = lin(keys[0], keys[1], in_feat, n_feat)  # NCHW row order

        h = hid_dim
        w0, b0 = lin(keys[2], keys[3], n_feat, h)
        w1, b1 = lin(keys[4], keys[5], h, h // 2)
        w2, b2 = lin(keys[6], keys[7], h // 2, h // 4)
        w3, b3 = lin(keys[8], keys[9], h // 4, n_cls)

        # --- fold (x - mean)/std into the visual projection (affine compose) --
        inv_std_rows = jnp.repeat(1.0 / std, height * width)  # NCHW flatten order
        mean_rows = jnp.repeat(mean, height * width)
        wv_folded = w_vis * inv_std_rows[:, None]
        b_vis_shift = b_vis - (mean_rows * inv_std_rows)[None, :] @ w_vis
        # --- fold the visual bias into the first head bias: b0' = b0 + bv @ W0
        b0_folded = b0 + b_vis_shift @ w0
        # --- fold NHWC->NCHW permute into the weight row order ----------------
        wv_folded = (wv_folded.reshape(c, height, width, n_feat)
                     .transpose(1, 2, 0, 3).reshape(in_feat, n_feat))

        # bf16 weight halves the dominant HBM transfer; MXU accumulates in f32.
        self.wv = wv_folded.astype(jnp.bfloat16)
        self.w0, self.b0 = w0, b0_folded
        self.w1, self.b1 = w1, b1
        self.w2, self.b2 = w2, b2
        # pad the 2-wide logits layer to 128 lanes -> unmasked lane-dense store
        self.n_cls = n_cls
        self.w3 = jnp.zeros((h // 4, 128), jnp.float32).at[:, :n_cls].set(w3)
        self.b3 = jnp.zeros((1, 128), jnp.float32).at[:, :n_cls].set(b3)

        # unfused f32 parameters, kept only for the correctness reference
        self._ref = (mean.reshape(1, 3, 1, 1), std.reshape(1, 3, 1, 1),
                     w_vis, b_vis, w0, b0, w1, b1, w2, b2, w3, b3)

    @functools.partial(jax.jit, static_argnums=0)
    def __call__(self, x_nhwc):
        b = x_nhwc.shape[0]
        bp = max(8, -(-b // 8) * 8)            # pad batch to a sublane multiple
        x_flat = x_nhwc.reshape(b, -1).astype(jnp.float32)
        x_pad = jnp.pad(x_flat, ((0, bp - b), (0, 0)))
        logits = classifier_forward(x_pad, self.wv, self.w0, self.b0,
                                    self.w1, self.b1, self.w2, self.b2,
                                    self.w3, self.b3)
        return logits[:b, :self.n_cls]

    def reference(self, x_nhwc):
        """Plain-JAX forward matching the original (unfolded, f32) path."""
        mean, std, w_vis, b_vis, w0, b0, w1, b1, w2, b2, w3, b3 = self._ref
        x = jnp.transpose(x_nhwc, (0, 3, 1, 2)).astype(jnp.float32)
        x = (x - mean) / std
        f = x.reshape(x.shape[0], -1) @ w_vis + b_vis
        hh = _quick_gelu(f @ w0 + b0)
        hh = _quick_gelu(hh @ w1 + b1)
        hh = _quick_gelu(hh @ w2 + b2)
        return hh @ w3 + b3


if __name__ == "__main__":
    key = jax.random.PRNGKey(0)
    k_model, k_input = jax.random.split(key)

    B, H, W = 2, 16, 16
    model = ClassifierPallas(k_model, hid_dim=32, height=H, width=W)

    # NHWC uint8-style pixel values in [0, 255]
    x = jax.random.uniform(k_input, (B, H, W, 3), jnp.float32,
                           minval=0.0, maxval=255.0)

    out = jax.block_until_ready(model(x))
    assert out.shape == (B, 2), out.shape

    # validate the weight folding / bf16 path against the unfused f32 reference
    ref = model.reference(x)
    assert jnp.allclose(out, ref, atol=5e-2, rtol=5e-2), (out, ref)

    print("KERNEL_OK")
</pallas_src>

<mosaic_0001>
module attributes {stable_mosaic.version = 11 : i64} {
  func.func @_classifier_kernel(%arg0: i32, %arg1: memref<8x768xf32, #tpu.memory_space<vmem>>, %arg2: memref<768x512xbf16, #tpu.memory_space<vmem>>, %arg3: memref<512x32xf32, #tpu.memory_space<vmem>>, %arg4: memref<1x32xf32, #tpu.memory_space<vmem>>, %arg5: memref<32x16xf32, #tpu.memory_space<vmem>>, %arg6: memref<1x16xf32, #tpu.memory_space<vmem>>, %arg7: memref<16x8xf32, #tpu.memory_space<vmem>>, %arg8: memref<1x8xf32, #tpu.memory_space<vmem>>, %arg9: memref<8x128xf32, #tpu.memory_space<vmem>>, %arg10: memref<1x128xf32, #tpu.memory_space<vmem>>, %arg11: memref<8x128xf32, #tpu.memory_space<vmem>>, %arg12: memref<8x32xf32, #tpu.memory_space<vmem>>) attributes {dimension_semantics = [#tpu.dimension_semantics<arbitrary>], iteration_bounds = array<i64: 2>, scalar_prefetch = 0 : i64, scratch_operands = 1 : i64, tpu.core_type = #tpu.core_type<tc>, window_params = [{pipeline_mode = #tpu.pipeline_mode<synchronous>, transform_indices = @transform_0, window_bounds = array<i64: 8, 768>}, {transform_indices = @transform_1, window_bounds = array<i64: 768, 512>}, {transform_indices = @transform_2, window_bounds = array<i64: 512, 32>}, {pipeline_mode = #tpu.pipeline_mode<synchronous>, transform_indices = @transform_3, window_bounds = array<i64: 1, 32>}, {pipeline_mode = #tpu.pipeline_mode<synchronous>, transform_indices = @transform_4, window_bounds = array<i64: 32, 16>}, {pipeline_mode = #tpu.pipeline_mode<synchronous>, transform_indices = @transform_5, window_bounds = array<i64: 1, 16>}, {pipeline_mode = #tpu.pipeline_mode<synchronous>, transform_indices = @transform_6, window_bounds = array<i64: 16, 8>}, {pipeline_mode = #tpu.pipeline_mode<synchronous>, transform_indices = @transform_7, window_bounds = array<i64: 1, 8>}, {pipeline_mode = #tpu.pipeline_mode<synchronous>, transform_indices = @transform_8, window_bounds = array<i64: 8, 128>}, {pipeline_mode = #tpu.pipeline_mode<synchronous>, transform_indices = @transform_9, window_bounds = array<i64: 1, 128>}, {pipeline_mode = #tpu.pipeline_mode<synchronous>, transform_indices = @transform_10, window_bounds = array<i64: 8, 128>}]} {
    %c0_i32 = arith.constant 0 : i32
    %0 = arith.cmpi eq, %arg0, %c0_i32 : i32
    %1 = arith.extui %0 : i1 to i32
    %c0_i32_0 = arith.constant 0 : i32
    %2 = arith.cmpi ne, %1, %c0_i32_0 : i32
    scf.if %2 {
      %cst_12 = arith.constant 0.000000e+00 : f32
      %15 = vector.broadcast %cst_12 : f32 to vector<8x32xf32>
      %c0_13 = arith.constant 0 : index
      %c0_14 = arith.constant 0 : index
      %16 = vector.load %arg12[%c0_13, %c0_14] : memref<8x32xf32, #tpu.memory_space<vmem>>, vector<8x32xf32>
      tpu.vector_store %arg12[%c0_13, %c0_14], %15 {strides = array<i32>} : memref<8x32xf32, #tpu.memory_space<vmem>>, vector<8x32xf32>,
    } else {
    }
    %c0 = arith.constant 0 : index
    %c0_1 = arith.constant 0 : index
    %3 = vector.load %arg1[%c0, %c0_1] : memref<8x768xf32, #tpu.memory_space<vmem>>, vector<8x768xf32>
    %4 = arith.truncf %3 : vector<8x768xf32> to vector<8x768xbf16>
    %c0_2 = arith.constant 0 : index
    %c0_3 = arith.constant 0 : index
    %5 = vector.load %arg2[%c0_2, %c0_3] : memref<768x512xbf16, #tpu.memory_space<vmem>>, vector<768x512xbf16>
    %cst = arith.constant dense<0.000000e+00> : vector<8x512xf32>
    %6 = tpu.matmul %4, %5, %cst {dimension_numbers = #tpu.dot_dimension_numbers<[1], [0], [0], [1], [0, 0, 1, 1], [], []>} : vector<8x768xbf16>, vector<768x512xbf16>, vector<8x512xf32> -> vector<8x512xf32>
    %c0_4 = arith.constant 0 : index
    %c0_5 = arith.constant 0 : index
    %7 = vector.load %arg12[%c0_4, %c0_5] : memref<8x32xf32, #tpu.memory_space<vmem>>, vector<8x32xf32>
    %c0_6 = arith.constant 0 : index
    %c0_7 = arith.constant 0 : index
    %8 = vector.load %arg3[%c0_6, %c0_7] : memref<512x32xf32, #tpu.memory_space<vmem>>, vector<512x32xf32>
    %cst_8 = arith.constant dense<0.000000e+00> : vector<8x32xf32>
    %9 = tpu.matmul %6, %8, %cst_8 {dimension_numbers = #tpu.dot_dimension_numbers<[1], [0], [0], [1], [0, 0, 1, 1], [], []>} : vector<8x512xf32>, vector<512x32xf32>, vector<8x32xf32> -> vector<8x32xf32>
    %10 = arith.addf %7, %9 : vector<8x32xf32>
    %c0_9 = arith.constant 0 : index
    %c0_10 = arith.constant 0 : index
    %11 = vector.load %arg12[%c0_9, %c0_10] : memref<8x32xf32, #tpu.memory_space<vmem>>, vector<8x32xf32>
    tpu.vector_store %arg12[%c0_9, %c0_10], %10 {strides = array<i32>} : memref<8x32xf32, #tpu.memory_space<vmem>>, vector<8x32xf32>,
    %c1_i32 = arith.constant 1 : i32
    %12 = arith.cmpi eq, %arg0, %c1_i32 : i32
    %13 = arith.extui %12 : i1 to i32
    %c0_i32_11 = arith.constant 0 : i32
    %14 = arith.cmpi ne, %13, %c0_i32_11 : i32
    scf.if %14 {
      %c0_12 = arith.constant 0 : index
      %c0_13 = arith.constant 0 : index
      %15 = vector.load %arg12[%c0_12, %c0_13] : memref<8x32xf32, #tpu.memory_space<vmem>>, vector<8x32xf32>
      %c0_14 = arith.constant 0 : index
      %c0_15 = arith.constant 0 : index
      %16 = vector.load %arg4[%c0_14, %c0_15] : memref<1x32xf32, #tpu.memory_space<vmem>>, vector<1x32xf32>
      %17 = vector.broadcast %16 : vector<1x32xf32> to vector<8x32xf32>
      %18 = arith.addf %15, %17 : vector<8x32xf32>
      %cst_16 = arith.constant 1.702000e+00 : f32
      %19 = vector.broadcast %cst_16 : f32 to vector<8x32xf32>
      %20 = arith.mulf %19, %18 : vector<8x32xf32>
      %21 = arith.negf %20 : vector<8x32xf32>
      %22 = math.exp %21 : vector<8x32xf32>
      %cst_17 = arith.constant 1.000000e+00 : f32
      %23 = vector.broadcast %cst_17 : f32 to vector<8x32xf32>
      %24 = arith.addf %23, %22 : vector<8x32xf32>
      %25 = arith.divf %23, %24 : vector<8x32xf32>
      %26 = arith.mulf %18, %25 : vector<8x32xf32>
      %c0_18 = arith.constant 0 : index
      %c0_19 = arith.constant 0 : index
      %27 = vector.load %arg5[%c0_18, %c0_19] : memref<32x16xf32, #tpu.memory_space<vmem>>, vector<32x16xf32>
      %cst_20 = arith.constant dense<0.000000e+00> : vector<8x16xf32>
      %28 = tpu.matmul %26, %27, %cst_20 {dimension_numbers = #tpu.dot_dimension_numbers<[1], [0], [0], [1], [0, 0, 1, 1], [], []>} : vector<8x32xf32>, vector<32x16xf32>, vector<8x16xf32> -> vector<8x16xf32>
      %c0_21 = arith.constant 0 : index
      %c0_22 = arith.constant 0 : index
      %29 = vector.load %arg6[%c0_21, %c0_22] : memref<1x16xf32, #tpu.memory_space<vmem>>, vector<1x16xf32>
      %30 = vector.broadcast %29 : vector<1x16xf32> to vector<8x16xf32>
      %31 = arith.addf %28, %30 : vector<8x16xf32>
      %cst_23 = arith.constant 1.702000e+00 : f32
      %32 = vector.broadcast %cst_23 : f32 to vector<8x16xf32>
      %33 = arith.mulf %32, %31 : vector<8x16xf32>
      %34 = arith.negf %33 : vector<8x16xf32>
      %35 = math.exp %34 : vector<8x16xf32>
      %cst_24 = arith.constant 1.000000e+00 : f32
      %36 = vector.broadcast %cst_24 : f32 to vector<8x16xf32>
      %37 = arith.addf %36, %35 : vector<8x16xf32>
      %38 = arith.divf %36, %37 : vector<8x16xf32>
      %39 = arith.mulf %31, %38 : vector<8x16xf32>
      %c0_25 = arith.constant 0 : index
      %c0_26 = arith.constant 0 : index
      %40 = vector.load %arg7[%c0_25, %c0_26] : memref<16x8xf32, #tpu.memory_space<vmem>>, vector<16x8xf32>
      %cst_27 = arith.constant dense<0.000000e+00> : vector<8x8xf32>
      %41 = tpu.matmul %39, %40, %cst_27 {dimension_numbers = #tpu.dot_dimension_numbers<[1], [0], [0], [1], [0, 0, 1, 1], [], []>} : vector<8x16xf32>, vector<16x8xf32>, vector<8x8xf32> -> vector<8x8xf32>
      %c0_28 = arith.constant 0 : index
      %c0_29 = arith.constant 0 : index
      %42 = vector.load %arg8[%c0_28, %c0_29] : memref<1x8xf32, #tpu.memory_space<vmem>>, vector<1x8xf32>
      %43 = vector.broadcast %42 : vector<1x8xf32> to vector<8x8xf32>
      %44 = arith.addf %41, %43 : vector<8x8xf32>
      %cst_30 = arith.constant 1.702000e+00 : f32
      %45 = vector.broadcast %cst_30 : f32 to vector<8x8xf32>
      %46 = arith.mulf %45, %44 : vector<8x8xf32>
      %47 = arith.negf %46 : vector<8x8xf32>
      %48 = math.exp %47 : vector<8x8xf32>
      %cst_31 = arith.constant 1.000000e+00 : f32
      %49 = vector.broadcast %cst_31 : f32 to vector<8x8xf32>
      %50 = arith.addf %49, %48 : vector<8x8xf32>
      %51 = arith.divf %49, %50 : vector<8x8xf32>
      %52 = arith.mulf %44, %51 : vector<8x8xf32>
      %c0_32 = arith.constant 0 : index
      %c0_33 = arith.constant 0 : index
      %53 = vector.load %arg9[%c0_32, %c0_33] : memref<8x128xf32, #tpu.memory_space<vmem>>, vector<8x128xf32>
      %cst_34 = arith.constant dense<0.000000e+00> : vector<8x128xf32>
      %54 = tpu.matmul %52, %53, %cst_34 {dimension_numbers = #tpu.dot_dimension_numbers<[1], [0], [0], [1], [0, 0, 1, 1], [], []>} : vector<8x8xf32>, vector<8x128xf32>, vector<8x128xf32> -> vector<8x128xf32>
      %c0_35 = arith.constant 0 : index
      %c0_36 = arith.constant 0 : index
      %55 = vector.load %arg10[%c0_35, %c0_36] : memref<1x128xf32, #tpu.memory_space<vmem>>, vector<1x128xf32>
      %56 = vector.broadcast %55 : vector<1x128xf32> to vector<8x128xf32>
      %57 = arith.addf %54, %56 : vector<8x128xf32>
      %c0_37 = arith.constant 0 : index
      %c0_38 = arith.constant 0 : index
      %58 = vector.load %arg11[%c0_37, %c0_38] : memref<8x128xf32, #tpu.memory_space<vmem>>, vector<8x128xf32>
      tpu.vector_store %arg11[%c0_37, %c0_38], %57 {strides = array<i32>} : memref<8x128xf32, #tpu.memory_space<vmem>>, vector<8x128xf32>,
    } else {
    }
    return
  }
  func.func @transform_0(%arg0: i32) -> (i32, i32) {
    %c0_i32 = arith.constant 0 : i32
    %c0_i32_0 = arith.constant 0 : i32
    %c0_i32_1 = arith.constant 0 : i32
    return %c0_i32, %c0_i32_0 : i32, i32
  }
  func.func @transform_1(%arg0: i32) -> (i32, i32) {
    %c0_i32 = arith.constant 0 : i32
    %c0_i32_0 = arith.constant 0 : i32
    return %c0_i32, %arg0 : i32, i32
  }
  func.func @transform_2(%arg0: i32) -> (i32, i32) {
    %c0_i32 = arith.constant 0 : i32
    %c0_i32_0 = arith.constant 0 : i32
    return %arg0, %c0_i32 : i32, i32
  }
  func.func @transform_3(%arg0: i32) -> (i32, i32) {
    %c0_i32 = arith.constant 0 : i32
    %c0_i32_0 = arith.constant 0 : i32
    %c0_i32_1 = arith.constant 0 : i32
    return %c0_i32, %c0_i32_0 : i32, i32
  }
  func.func @transform_4(%arg0: i32) -> (i32, i32) {
    %c0_i32 = arith.constant 0 : i32
    %c0_i32_0 = arith.constant 0 : i32
    %c0_i32_1 = arith.constant 0 : i32
    return %c0_i32, %c0_i32_0 : i32, i32
  }
  func.func @transform_5(%arg0: i32) -> (i32, i32) {
    %c0_i32 = arith.constant 0 : i32
    %c0_i32_0 = arith.constant 0 : i32
    %c0_i32_1 = arith.constant 0 : i32
    return %c0_i32, %c0_i32_0 : i32, i32
  }
  func.func @transform_6(%arg0: i32) -> (i32, i32) {
    %c0_i32 = arith.constant 0 : i32
    %c0_i32_0 = arith.constant 0 : i32
    %c0_i32_1 = arith.constant 0 : i32
    return %c0_i32, %c0_i32_0 : i32, i32
  }
  func.func @transform_7(%arg0: i32) -> (i32, i32) {
    %c0_i32 = arith.constant 0 : i32
    %c0_i32_0 = arith.constant 0 : i32
    %c0_i32_1 = arith.constant 0 : i32
    return %c0_i32, %c0_i32_0 : i32, i32
  }
  func.func @transform_8(%arg0: i32) -> (i32, i32) {
    %c0_i32 = arith.constant 0 : i32
    %c0_i32_0 = arith.constant 0 : i32
    %c0_i32_1 = arith.constant 0 : i32
    return %c0_i32, %c0_i32_0 : i32, i32
  }
  func.func @transform_9(%arg0: i32) -> (i32, i32) {
    %c0_i32 = arith.constant 0 : i32
    %c0_i32_0 = arith.constant 0 : i32
    %c0_i32_1 = arith.constant 0 : i32
    return %c0_i32, %c0_i32_0 : i32, i32
  }
  func.func @transform_10(%arg0: i32) -> (i32, i32) {
    %c0_i32 = arith.constant 0 : i32
    %c0_i32_0 = arith.constant 0 : i32
    %c0_i32_1 = arith.constant 0 : i32
    return %c0_i32, %c0_i32_0 : i32, i32
  }
}

</mosaic_0001>

<bundles_post_ra>
// kernel: a_call__.1
= control target key start
LH: loop header
LB: loop body
LE: loop exit
PB: predicated region body
PF: predicated region fallthrough
CT: control target
= control target key end

     0   :  { %s3547_s13 = smov 0   ;;  %s3549_s14 = smov 0   ;;  %s4309_s0 = inlined_call_operand.vmem [shape: f32[8,768], index: 0, kind: input, shape index: {}]   ;;  %s4310_s1 = inlined_call_operand.vmem [shape: bf16[768,1024], index: 1, kind: input, shape index: {}]   ;;  %s4311_s2 = inlined_call_operand.vmem [shape: f32[1024,32], index: 2, kind: input, shape index: {}]   ;;  %s4312_s3 = inlined_call_operand.vmem [shape: f32[1,32], index: 3, kind: input, shape index: {}]   ;;  %s4313_s4 = inlined_call_operand.vmem [shape: f32[32,16], index: 4, kind: input, shape index: {}]   ;;  %s4314_s5 = inlined_call_operand.vmem [shape: f32[1,16], index: 5, kind: input, shape index: {}]   ;;  %s4315_s6 = inlined_call_operand.vmem [shape: f32[16,8], index: 6, kind: input, shape index: {}]   ;;  %s4316_s7 = inlined_call_operand.vmem [shape: f32[1,8], index: 7, kind: input, shape index: {}]   ;;  %s4317_s8 = inlined_call_operand.vmem [shape: f32[8,128], index: 8, kind: input, shape index: {}]   ;;  %s4318_s9 = inlined_call_operand.vmem [shape: f32[1,128], index: 9, kind: input, shape index: {}]   ;;  %s4319_s10 = inlined_call_operand.vmem [shape: f32[8,128], index: 10, kind: output, shape index: {}]  }
   0x1   :  { %s3551_s15 = smov 0  }
   0x2 LB: > { %s3563_s16 = sadd.s32 4294967295, %s3486_s15   ;;  %s3566_s17 = sadd.s32 1, %s3486_s15   ;;  %s3486_s15 = sphi %s3551_s15, %s4322_s15   ;;  %s3482_s14 = sphi %s3549_s14, %s4321_s14   ;;  %s3478_s13 = sphi %s3547_s13, %s4320_s13  }
   0x3   : > { %s45_s18 = ssub.s32 %s3486_s15, %s3566_s17  ;;  %s48_s19 = sadd.s32 1, %s3482_s14 }
   0x4   : > { %p46_p0 = scmp.eq.s32.totalorder %s45_s18, 0  ;;  %p55_p1 = scmp.ne.s32.totalorder %s3482_s14, %s3478_s13 }
   0x5   : > { %p56_p2 = scmp.eq.s32.totalorder %s3486_s15, 0  ;;  %p2729_p4 = scmp.ge.s32.totalorder %s3486_s15, 2 }
   0x6   : > { %s3575_s20 = scalar_select %p46_p0, %s3482_s14, %s48_s19  }
   0x7   : > { %p57_p3 = por %p56_p2, %p55_p1  ;;  %299 = sbr.rel (%p2729_p4) target bundleno = 114 (0x72), region = 48 }
   0xe   : > { %302 = sbr.rel (!%p57_p3) target bundleno = 114 (0x72), region = 52  ;;  %s304_s21 = sand.u32 (%p57_p3), 1, %s3482_s14  }
   0xf   : > { %s2941_s22 = sshll.u32 (%p57_p3), %s3486_s15, 4  ;;  %s3134_s23 = smul.u32 (%p57_p3), 1536, %s304_s21 }
  0x10   : > { %s3583_s26 = scalar_lea.vmem (%p57_p3), %s4310_s1, %s2941_s22 }
  0x11   : > { %v322_v0 = vld [vmem:[%s3583_s26] sm:$0xff] (%p57_p3)  ;;  %v324_v1 = vld [vmem:[%s3583_s26 + $0x8] sm:$0xff] (%p57_p3)  ;;  %s3591_s27 = scalar_lea.vmem (%p57_p3), [#allocation3], %s3134_s23 }
  0x12   : > { %v326_v2 = vld [vmem:[%s3583_s26 + $0x20] sm:$0xff] (%p57_p3)  ;;  %v328_v3 = vld [vmem:[%s3583_s26 + $0x28] sm:$0xff] (%p57_p3)  ;;  %323 = vst [vmem:[%s3591_s27] sm:$0xff] (%p57_p3), %v322_v0  ;;  %325 = vst [vmem:[%s3591_s27 + $0x8] sm:$0xff] (%p57_p3), %v324_v1 }
  0x13   : > { %v330_v4 = vld [vmem:[%s3583_s26 + $0x40] sm:$0xff] (%p57_p3)  ;;  %v332_v5 = vld [vmem:[%s3583_s26 + $0x48] sm:$0xff] (%p57_p3)  ;;  %327 = vst [vmem:[%s3591_s27 + $0x10] sm:$0xff] (%p57_p3), %v326_v2  ;;  %329 = vst [vmem:[%s3591_s27 + $0x18] sm:$0xff] (%p57_p3), %v328_v3 }
  0x14   : > { %331 = vst [vmem:[%s3591_s27 + $0x20] sm:$0xff] (%p57_p3), %v330_v4  ;;  %333 = vst [vmem:[%s3591_s27 + $0x28] sm:$0xff] (%p57_p3), %v332_v5  ;;  %v334_v6 = vld [vmem:[%s3583_s26 + $0x60] sm:$0xff] (%p57_p3)  ;;  %v336_v7 = vld [vmem:[%s3583_s26 + $0x68] sm:$0xff] (%p57_p3) }
  0x15   : > { %v338_v8 = vld [vmem:[%s3583_s26 + $0x80] sm:$0xff]  ;;  %335 = vst [vmem:[%s3591_s27 + $0x30] sm:$0xff] %v334_v6  ;;  %337 = vst [vmem:[%s3591_s27 + $0x38] sm:$0xff] %v336_v7  ;;  %v340_v9 = vld [vmem:[%s3583_s26 + $0x88] sm:$0xff] }
  0x16   : > { %339 = vst [vmem:[%s3591_s27 + $0x40] sm:$0xff] %v338_v8  ;;  %v342_v10 = vld [vmem:[%s3583_s26 + $0xa0] sm:$0xff]  ;;  %v344_v11 = vld [vmem:[%s3583_s26 + $0xa8] sm:$0xff]  ;;  %341 = vst [vmem:[%s3591_s27 + $0x48] sm:$0xff] %v340_v9 }
  0x17   : > { %343 = vst [vmem:[%s3591_s27 + $0x50] sm:$0xff] %v342_v10  ;;  %345 = vst [vmem:[%s3591_s27 + $0x58] sm:$0xff] %v344_v11  ;;  %v346_v12 = vld [vmem:[%s3583_s26 + $0xc0] sm:$0xff]  ;;  %v348_v13 = vld [vmem:[%s3583_s26 + $0xc8] sm:$0xff] }
  0x18   : > { %v350_v14 = vld [vmem:[%s3583_s26 + $0xe0] sm:$0xff]  ;;  %347 = vst [vmem:[%s3591_s27 + $0x60] sm:$0xff] %v346_v12  ;;  %349 = vst [vmem:[%s3591_s27 + $0x68] sm:$0xff] %v348_v13  ;;  %v352_v15 = vld [vmem:[%s3583_s26 + $0xe8] sm:$0xff] }
  0x19   : > { %351 = vst [vmem:[%s3591_s27 + $0x70] sm:$0xff] %v350_v14  ;;  %v354_v16 = vld [vmem:[%s3583_s26 + $0x100] sm:$0xff]  ;;  %v356_v17 = vld [vmem:[%s3583_s26 + $0x108] sm:$0xff]  ;;  %353 = vst [vmem:[%s3591_s27 + $0x78] sm:$0xff] %v352_v15 }
  0x1a   : > { %355 = vst [vmem:[%s3591_s27 + $0x80] sm:$0xff] %v354_v16  ;;  %357 = vst [vmem:[%s3591_s27 + $0x88] sm:$0xff] %v356_v17  ;;  %v358_v18 = vld [vmem:[%s3583_s26 + $0x120] sm:$0xff]  ;;  %v360_v19 = vld [vmem:[%s3583_s26 + $0x128] sm:$0xff] }
  0x1b   : > { %v362_v20 = vld [vmem:[%s3583_s26 + $0x140] sm:$0xff]  ;;  %359 = vst [vmem:[%s3591_s27 + $0x90] sm:$0xff] %v358_v18  ;;  %361 = vst [vmem:[%s3591_s27 + $0x98] sm:$0xff] %v360_v19  ;;  %v364_v21 = vld [vmem:[%s3583_s26 + $0x148] sm:$0xff] }
  0x1c   : > { %363 = vst [vmem:[%s3591_s27 + $0xa0] sm:$0xff] %v362_v20  ;;  %v366_v22 = vld [vmem:[%s3583_s26 + $0x160] sm:$0xff]  ;;  %v368_v23 = vld [vmem:[%s3583_s26 + $0x168] sm:$0xff]  ;;  %365 = vst [vmem:[%s3591_s27 + $0xa8] sm:$0xff] %v364_v21 }
  0x1d   : > { %367 = vst [vmem:[%s3591_s27 + $0xb0] sm:$0xff] %v366_v22  ;;  %369 = vst [vmem:[%s3591_s27 + $0xb8] sm:$0xff] %v368_v23  ;;  %v370_v24 = vld [vmem:[%s3583_s26 + $0x180] sm:$0xff]  ;;  %v372_v25 = vld [vmem:[%s3583_s26 + $0x188] sm:$0xff] }
  0x1e   : > { %v374_v26 = vld [vmem:[%s3583_s26 + $0x1a0] sm:$0xff]  ;;  %371 = vst [vmem:[%s3591_s27 + $0xc0] sm:$0xff] %v370_v24  ;;  %373 = vst [vmem:[%s3591_s27 + $0xc8] sm:$0xff] %v372_v25  ;;  %v376_v27 = vld [vmem:[%s3583_s26 + $0x1a8] sm:$0xff] }
  0x1f   : > { %375 = vst [vmem:[%s3591_s27 + $0xd0] sm:$0xff] %v374_v26  ;;  %v378_v28 = vld [vmem:[%s3583_s26 + $0x1c0] sm:$0xff]  ;;  %v380_v29 = vld [vmem:[%s3583_s26 + $0x1c8] sm:$0xff]  ;;  %377 = vst [vmem:[%s3591_s27 + $0xd8] sm:$0xff] %v376_v27 }
  0x20   : > { %379 = vst [vmem:[%s3591_s27 + $0xe0] sm:$0xff] %v378_v28  ;;  %381 = vst [vmem:[%s3591_s27 + $0xe8] sm:$0xff] %v380_v29  ;;  %v382_v30 = vld [vmem:[%s3583_s26 + $0x1e0] sm:$0xff]  ;;  %v384_v31 = vld [vmem:[%s3583_s26 + $0x1e8] sm:$0xff] }
  0x21   : > { %v386_v32 = vld [vmem:[%s3583_s26 + $0x200] sm:$0xff]  ;;  %383 = vst [vmem:[%s3591_s27 + $0xf0] sm:$0xff] %v382_v30  ;;  %385 = vst [vmem:[%s3591_s27 + $0xf8] sm:$0xff] %v384_v31  ;;  %v388_v33 = vld [vmem:[%s3583_s26 + $0x208] sm:$0xff] }
  0x22   : > { %387 = vst [vmem:[%s3591_s27 + $0x100] sm:$0xff] %v386_v32  ;;  %v390_v34 = vld [vmem:[%s3583_s26 + $0x220] sm:$0xff]  ;;  %v392_v35 = vld [vmem:[%s3583_s26 + $0x228] sm:$0xff]  ;;  %389 = vst [vmem:[%s3591_s27 + $0x108] sm:$0xff] %v388_v33 }
  0x23   : > { %391 = vst [vmem:[%s3591_s27 + $0x110] sm:$0xff] %v390_v34  ;;  %393 = vst [vmem:[%s3591_s27 + $0x118] sm:$0xff] %v392_v35  ;;  %v394_v36 = vld [vmem:[%s3583_s26 + $0x240] sm:$0xff]  ;;  %v396_v37 = vld [vmem:[%s3583_s26 + $0x248] sm:$0xff] }
  0x24   : > { %v398_v38 = vld [vmem:[%s3583_s26 + $0x260] sm:$0xff]  ;;  %395 = vst [vmem:[%s3591_s27 + $0x120] sm:$0xff] %v394_v36  ;;  %397 = vst [vmem:[%s3591_s27 + $0x128] sm:$0xff] %v396_v37  ;;  %v400_v39 = vld [vmem:[%s3583_s26 + $0x268] sm:$0xff] }
  0x25   : > { %399 = vst [vmem:[%s3591_s27 + $0x130] sm:$0xff] %v398_v38  ;;  %v402_v40 = vld [vmem:[%s3583_s26 + $0x280] sm:$0xff]  ;;  %v404_v41 = vld [vmem:[%s3583_s26 + $0x288] sm:$0xff]  ;;  %401 = vst [vmem:[%s3591_s27 + $0x138] sm:$0xff] %v400_v39 }
  0x26   : > { %403 = vst [vmem:[%s3591_s27 + $0x140] sm:$0xff] %v402_v40  ;;  %405 = vst [vmem:[%s3591_s27 + $0x148] sm:$0xff] %v404_v41  ;;  %v406_v42 = vld [vmem:[%s3583_s26 + $0x2a0] sm:$0xff]  ;;  %v408_v43 = vld [vmem:[%s3583_s26 + $0x2a8] sm:$0xff] }
  0x27   : > { %v410_v44 = vld [vmem:[%s3583_s26 + $0x2c0] sm:$0xff]  ;;  %407 = vst [vmem:[%s3591_s27 + $0x150] sm:$0xff] %v406_v42  ;;  %409 = vst [vmem:[%s3591_s27 + $0x158] sm:$0xff] %v408_v43  ;;  %v412_v45 = vld [vmem:[%s3583_s26 + $0x2c8] sm:$0xff] }
  0x28   : > { %411 = vst [vmem:[%s3591_s27 + $0x160] sm:$0xff] %v410_v44  ;;  %v414_v46 = vld [vmem:[%s3583_s26 + $0x2e0] sm:$0xff]  ;;  %v416_v47 = vld [vmem:[%s3583_s26 + $0x2e8] sm:$0xff]  ;;  %413 = vst [vmem:[%s3591_s27 + $0x168] sm:$0xff] %v412_v45 }
  0x29   : > { %415 = vst [vmem:[%s3591_s27 + $0x170] sm:$0xff] %v414_v46  ;;  %417 = vst [vmem:[%s3591_s27 + $0x178] sm:$0xff] %v416_v47  ;;  %v418_v48 = vld [vmem:[%s3583_s26 + $0x300] sm:$0xff]  ;;  %v420_v49 = vld [vmem:[%s3583_s26 + $0x308] sm:$0xff] }
  0x2a   : > { %v422_v50 = vld [vmem:[%s3583_s26 + $0x320] sm:$0xff]  ;;  %419 = vst [vmem:[%s3591_s27 + $0x180] sm:$0xff] %v418_v48  ;;  %421 = vst [vmem:[%s3591_s27 + $0x188] sm:$0xff] %v420_v49  ;;  %v424_v51 = vld [vmem:[%s3583_s26 + $0x328] sm:$0xff] }
  0x2b   : > { %423 = vst [vmem:[%s3591_s27 + $0x190] sm:$0xff] %v422_v50  ;;  %v426_v52 = vld [vmem:[%s3583_s26 + $0x340] sm:$0xff]  ;;  %v428_v53 = vld [vmem:[%s3583_s26 + $0x348] sm:$0xff]  ;;  %425 = vst [vmem:[%s3591_s27 + $0x198] sm:$0xff] %v424_v51 }
  0x2c   : > { %427 = vst [vmem:[%s3591_s27 + $0x1a0] sm:$0xff] %v426_v52  ;;  %429 = vst [vmem:[%s3591_s27 + $0x1a8] sm:$0xff] %v428_v53  ;;  %v430_v54 = vld [vmem:[%s3583_s26 + $0x360] sm:$0xff]  ;;  %v432_v55 = vld [vmem:[%s3583_s26 + $0x368] sm:$0xff] }
  0x2d   : > { %v434_v56 = vld [vmem:[%s3583_s26 + $0x380] sm:$0xff]  ;;  %431 = vst [vmem:[%s3591_s27 + $0x1b0] sm:$0xff] %v430_v54  ;;  %433 = vst [vmem:[%s3591_s27 + $0x1b8] sm:$0xff] %v432_v55  ;;  %v436_v57 = vld [vmem:[%s3583_s26 + $0x388] sm:$0xff] }
  0x2e   : > { %435 = vst [vmem:[%s3591_s27 + $0x1c0] sm:$0xff] %v434_v56  ;;  %v438_v58 = vld [vmem:[%s3583_s26 + $0x3a0] sm:$0xff]  ;;  %v440_v59 = vld [vmem:[%s3583_s26 + $0x3a8] sm:$0xff]  ;;  %437 = vst [vmem:[%s3591_s27 + $0x1c8] sm:$0xff] %v436_v57 }
  0x2f   : > { %439 = vst [vmem:[%s3591_s27 + $0x1d0] sm:$0xff] %v438_v58  ;;  %441 = vst [vmem:[%s3591_s27 + $0x1d8] sm:$0xff] %v440_v59  ;;  %v442_v60 = vld [vmem:[%s3583_s26 + $0x3c0] sm:$0xff]  ;;  %v444_v61 = vld [vmem:[%s3583_s26 + $0x3c8] sm:$0xff] }
  0x30   : > { %v446_v62 = vld [vmem:[%s3583_s26 + $0x3e0] sm:$0xff]  ;;  %443 = vst [vmem:[%s3591_s27 + $0x1e0] sm:$0xff] %v442_v60  ;;  %445 = vst [vmem:[%s3591_s27 + $0x1e8] sm:$0xff] %v444_v61  ;;  %v448_v63 = vld [vmem:[%s3583_s26 + $0x3e8] sm:$0xff] }
  0x31   : > { %447 = vst [vmem:[%s3591_s27 + $0x1f0] sm:$0xff] %v446_v62  ;;  %v450_v0 = vld [vmem:[%s3583_s26 + $0x400] sm:$0xff]  ;;  %v452_v1 = vld [vmem:[%s3583_s26 + $0x408] sm:$0xff]  ;;  %449 = vst [vmem:[%s3591_s27 + $0x1f8] sm:$0xff] %v448_v63 }
  0x32   : > { %451 = vst [vmem:[%s3591_s27 + $0x200] sm:$0xff] %v450_v0  ;;  %453 = vst [vmem:[%s3591_s27 + $0x208] sm:$0xff] %v452_v1  ;;  %v454_v2 = vld [vmem:[%s3583_s26 + $0x420] sm:$0xff]  ;;  %v456_v3 = vld [vmem:[%s3583_s26 + $0x428] sm:$0xff] }
  0x33   : > { %v458_v4 = vld [vmem:[%s3583_s26 + $0x440] sm:$0xff]  ;;  %455 = vst [vmem:[%s3591_s27 + $0x210] sm:$0xff] %v454_v2  ;;  %457 = vst [vmem:[%s3591_s27 + $0x218] sm:$0xff] %v456_v3  ;;  %v460_v5 = vld [vmem:[%s3583_s26 + $0x448] sm:$0xff] }
  0x34   : > { %459 = vst [vmem:[%s3591_s27 + $0x220] sm:$0xff] %v458_v4  ;;  %v462_v6 = vld [vmem:[%s3583_s26 + $0x460] sm:$0xff]  ;;  %v464_v7 = vld [vmem:[%s3583_s26 + $0x468] sm:$0xff]  ;;  %461 = vst [vmem:[%s3591_s27 + $0x228] sm:$0xff] %v460_v5 }
  0x35   : > { %463 = vst [vmem:[%s3591_s27 + $0x230] sm:$0xff] %v462_v6  ;;  %465 = vst [vmem:[%s3591_s27 + $0x238] sm:$0xff] %v464_v7  ;;  %v466_v8 = vld [vmem:[%s3583_s26 + $0x480] sm:$0xff]  ;;  %v468_v9 = vld [vmem:[%s3583_s26 + $0x488] sm:$0xff] }
  0x36   : > { %v470_v10 = vld [vmem:[%s3583_s26 + $0x4a0] sm:$0xff]  ;;  %467 = vst [vmem:[%s3591_s27 + $0x240] sm:$0xff] %v466_v8  ;;  %469 = vst [vmem:[%s3591_s27 + $0x248] sm:$0xff] %v468_v9  ;;  %v472_v11 = vld [vmem:[%s3583_s26 + $0x4a8] sm:$0xff] }
  0x37   : > { %471 = vst [vmem:[%s3591_s27 + $0x250] sm:$0xff] %v470_v10  ;;  %v474_v12 = vld [vmem:[%s3583_s26 + $0x4c0] sm:$0xff]  ;;  %v476_v13 = vld [vmem:[%s3583_s26 + $0x4c8] sm:$0xff]  ;;  %473 = vst [vmem:[%s3591_s27 + $0x258] sm:$0xff] %v472_v11 }
  0x38   : > { %475 = vst [vmem:[%s3591_s27 + $0x260] sm:$0xff] %v474_v12  ;;  %477 = vst [vmem:[%s3591_s27 + $0x268] sm:$0xff] %v476_v13  ;;  %v478_v14 = vld [vmem:[%s3583_s26 + $0x4e0] sm:$0xff]  ;;  %v480_v15 = vld [vmem:[%s3583_s26 + $0x4e8] sm:$0xff] }
  0x39   : > { %v482_v16 = vld [vmem:[%s3583_s26 + $0x500] sm:$0xff]  ;;  %479 = vst [vmem:[%s3591_s27 + $0x270] sm:$0xff] %v478_v14  ;;  %481 = vst [vmem:[%s3591_s27 + $0x278] sm:$0xff] %v480_v15  ;;  %v484_v17 = vld [vmem:[%s3583_s26 + $0x508] sm:$0xff] }
  0x3a   : > { %483 = vst [vmem:[%s3591_s27 + $0x280] sm:$0xff] %v482_v16  ;;  %v486_v18 = vld [vmem:[%s3583_s26 + $0x520] sm:$0xff]  ;;  %v488_v19 = vld [vmem:[%s3583_s26 + $0x528] sm:$0xff]  ;;  %485 = vst [vmem:[%s3591_s27 + $0x288] sm:$0xff] %v484_v17 }
  0x3b   : > { %487 = vst [vmem:[%s3591_s27 + $0x290] sm:$0xff] %v486_v18  ;;  %489 = vst [vmem:[%s3591_s27 + $0x298] sm:$0xff] %v488_v19  ;;  %v490_v20 = vld [vmem:[%s3583_s26 + $0x540] sm:$0xff]  ;;  %v492_v21 = vld [vmem:[%s3583_s26 + $0x548] sm:$0xff] }
  0x3c   : > { %v494_v22 = vld [vmem:[%s3583_s26 + $0x560] sm:$0xff]  ;;  %491 = vst [vmem:[%s3591_s27 + $0x2a0] sm:$0xff] %v490_v20  ;;  %493 = vst [vmem:[%s3591_s27 + $0x2a8] sm:$0xff] %v492_v21  ;;  %v496_v23 = vld [vmem:[%s3583_s26 + $0x568] sm:$0xff] }
  0x3d   : > { %495 = vst [vmem:[%s3591_s27 + $0x2b0] sm:$0xff] %v494_v22  ;;  %v498_v24 = vld [vmem:[%s3583_s26 + $0x580] sm:$0xff]  ;;  %v500_v25 = vld [vmem:[%s3583_s26 + $0x588] sm:$0xff]  ;;  %497 = vst [vmem:[%s3591_s27 + $0x2b8] sm:$0xff] %v496_v23 }
  0x3e   : > { %499 = vst [vmem:[%s3591_s27 + $0x2c0] sm:$0xff] %v498_v24  ;;  %501 = vst [vmem:[%s3591_s27 + $0x2c8] sm:$0xff] %v500_v25  ;;  %v502_v26 = vld [vmem:[%s3583_s26 + $0x5a0] sm:$0xff]  ;;  %v504_v27 = vld [vmem:[%s3583_s26 + $0x5a8] sm:$0xff] }
  0x3f   : > { %v506_v28 = vld [vmem:[%s3583_s26 + $0x5c0] sm:$0xff]  ;;  %503 = vst [vmem:[%s3591_s27 + $0x2d0] sm:$0xff] %v502_v26  ;;  %505 = vst [vmem:[%s3591_s27 + $0x2d8] sm:$0xff] %v504_v27  ;;  %v508_v29 = vld [vmem:[%s3583_s26 + $0x5c8] sm:$0xff] }
  0x40   : > { %507 = vst [vmem:[%s3591_s27 + $0x2e0] sm:$0xff] %v506_v28  ;;  %v510_v30 = vld [vmem:[%s3583_s26 + $0x5e0] sm:$0xff]  ;;  %v512_v31 = vld [vmem:[%s3583_s26 + $0x5e8] sm:$0xff]  ;;  %509 = vst [vmem:[%s3591_s27 + $0x2e8] sm:$0xff] %v508_v29 }
  0x41   : > { %511 = vst [vmem:[%s3591_s27 + $0x2f0] sm:$0xff] %v510_v30  ;;  %513 = vst [vmem:[%s3591_s27 + $0x2f8] sm:$0xff] %v512_v31  ;;  %v514_v32 = vld [vmem:[%s3583_s26 + $0x600] sm:$0xff]  ;;  %v516_v33 = vld [vmem:[%s3583_s26 + $0x608] sm:$0xff] }
  0x42   : > { %v518_v34 = vld [vmem:[%s3583_s26 + $0x620] sm:$0xff]  ;;  %515 = vst [vmem:[%s3591_s27 + $0x300] sm:$0xff] %v514_v32  ;;  %517 = vst [vmem:[%s3591_s27 + $0x308] sm:$0xff] %v516_v33  ;;  %v520_v35 = vld [vmem:[%s3583_s26 + $0x628] sm:$0xff] }
  0x43   : > { %519 = vst [vmem:[%s3591_s27 + $0x310] sm:$0xff] %v518_v34  ;;  %v522_v36 = vld [vmem:[%s3583_s26 + $0x640] sm:$0xff]  ;;  %v524_v37 = vld [vmem:[%s3583_s26 + $0x648] sm:$0xff]  ;;  %521 = vst [vmem:[%s3591_s27 + $0x318] sm:$0xff] %v520_v35 }
  0x44   : > { %523 = vst [vmem:[%s3591_s27 + $0x320] sm:$0xff] %v522_v36  ;;  %525 = vst [vmem:[%s3591_s27 + $0x328] sm:$0xff] %v524_v37  ;;  %v526_v38 = vld [vmem:[%s3583_s26 + $0x660] sm:$0xff]  ;;  %v528_v39 = vld [vmem:[%s3583_s26 + $0x668] sm:$0xff] }
  0x45   : > { %v530_v40 = vld [vmem:[%s3583_s26 + $0x680] sm:$0xff]  ;;  %527 = vst [vmem:[%s3591_s27 + $0x330] sm:$0xff] %v526_v38  ;;  %529 = vst [vmem:[%s3591_s27 + $0x338] sm:$0xff] %v528_v39  ;;  %v532_v41 = vld [vmem:[%s3583_s26 + $0x688] sm:$0xff] }
  0x46   : > { %531 = vst [vmem:[%s3591_s27 + $0x340] sm:$0xff] %v530_v40  ;;  %v534_v42 = vld [vmem:[%s3583_s26 + $0x6a0] sm:$0xff]  ;;  %v536_v43 = vld [vmem:[%s3583_s26 + $0x6a8] sm:$0xff]  ;;  %533 = vst [vmem:[%s3591_s27 + $0x348] sm:$0xff] %v532_v41 }
  0x47   : > { %535 = vst [vmem:[%s3591_s27 + $0x350] sm:$0xff] %v534_v42  ;;  %537 = vst [vmem:[%s3591_s27 + $0x358] sm:$0xff] %v536_v43  ;;  %v538_v44 = vld [vmem:[%s3583_s26 + $0x6c0] sm:$0xff]  ;;  %v540_v45 = vld [vmem:[%s3583_s26 + $0x6c8] sm:$0xff] }
  0x48   : > { %v542_v46 = vld [vmem:[%s3583_s26 + $0x6e0] sm:$0xff]  ;;  %539 = vst [vmem:[%s3591_s27 + $0x360] sm:$0xff] %v538_v44  ;;  %541 = vst [vmem:[%s3591_s27 + $0x368] sm:$0xff] %v540_v45  ;;  %v544_v47 = vld [vmem:[%s3583_s26 + $0x6e8] sm:$0xff] }
  0x49   : > { %543 = vst [vmem:[%s3591_s27 + $0x370] sm:$0xff] %v542_v46  ;;  %v546_v48 = vld [vmem:[%s3583_s26 + $0x700] sm:$0xff]  ;;  %v548_v49 = vld [vmem:[%s3583_s26 + $0x708] sm:$0xff]  ;;  %545 = vst [vmem:[%s3591_s27 + $0x378] sm:$0xff] %v544_v47 }
  0x4a   : > { %547 = vst [vmem:[%s3591_s27 + $0x380] sm:$0xff] %v546_v48  ;;  %549 = vst [vmem:[%s3591_s27 + $0x388] sm:$0xff] %v548_v49  ;;  %v550_v50 = vld [vmem:[%s3583_s26 + $0x720] sm:$0xff]  ;;  %v552_v51 = vld [vmem:[%s3583_s26 + $0x728] sm:$0xff] }
  0x4b   : > { %v554_v52 = vld [vmem:[%s3583_s26 + $0x740] sm:$0xff]  ;;  %551 = vst [vmem:[%s3591_s27 + $0x390] sm:$0xff] %v550_v50  ;;  %553 = vst [vmem:[%s3591_s27 + $0x398] sm:$0xff] %v552_v51  ;;  %v556_v53 = vld [vmem:[%s3583_s26 + $0x748] sm:$0xff] }
  0x4c   : > { %555 = vst [vmem:[%s3591_s27 + $0x3a0] sm:$0xff] %v554_v52  ;;  %v558_v54 = vld [vmem:[%s3583_s26 + $0x760] sm:$0xff]  ;;  %v560_v55 = vld [vmem:[%s3583_s26 + $0x768] sm:$0xff]  ;;  %557 = vst [vmem:[%s3591_s27 + $0x3a8] sm:$0xff] %v556_v53 }
  0x4d   : > { %559 = vst [vmem:[%s3591_s27 + $0x3b0] sm:$0xff] %v558_v54  ;;  %561 = vst [vmem:[%s3591_s27 + $0x3b8] sm:$0xff] %v560_v55  ;;  %v562_v56 = vld [vmem:[%s3583_s26 + $0x780] sm:$0xff]  ;;  %v564_v57 = vld [vmem:[%s3583_s26 + $0x788] sm:$0xff] }
  0x4e   : > { %v566_v58 = vld [vmem:[%s3583_s26 + $0x7a0] sm:$0xff]  ;;  %563 = vst [vmem:[%s3591_s27 + $0x3c0] sm:$0xff] %v562_v56  ;;  %565 = vst [vmem:[%s3591_s27 + $0x3c8] sm:$0xff] %v564_v57  ;;  %v568_v59 = vld [vmem:[%s3583_s26 + $0x7a8] sm:$0xff] }
  0x4f   : > { %567 = vst [vmem:[%s3591_s27 + $0x3d0] sm:$0xff] %v566_v58  ;;  %v570_v60 = vld [vmem:[%s3583_s26 + $0x7c0] sm:$0xff]  ;;  %v572_v61 = vld [vmem:[%s3583_s26 + $0x7c8] sm:$0xff]  ;;  %569 = vst [vmem:[%s3591_s27 + $0x3d8] sm:$0xff] %v568_v59 }
  0x50   : > { %571 = vst [vmem:[%s3591_s27 + $0x3e0] sm:$0xff] %v570_v60  ;;  %573 = vst [vmem:[%s3591_s27 + $0x3e8] sm:$0xff] %v572_v61  ;;  %v574_v62 = vld [vmem:[%s3583_s26 + $0x7e0] sm:$0xff]  ;;  %v576_v63 = vld [vmem:[%s3583_s26 + $0x7e8] sm:$0xff] }
  0x51   : > { %v578_v0 = vld [vmem:[%s3583_s26 + $0x800] sm:$0xff]  ;;  %575 = vst [vmem:[%s3591_s27 + $0x3f0] sm:$0xff] %v574_v62  ;;  %577 = vst [vmem:[%s3591_s27 + $0x3f8] sm:$0xff] %v576_v63  ;;  %v580_v1 = vld [vmem:[%s3583_s26 + $0x808] sm:$0xff] }
  0x52   : > { %579 = vst [vmem:[%s3591_s27 + $0x400] sm:$0xff] %v578_v0  ;;  %v582_v2 = vld [vmem:[%s3583_s26 + $0x820] sm:$0xff]  ;;  %v584_v3 = vld [vmem:[%s3583_s26 + $0x828] sm:$0xff]  ;;  %581 = vst [vmem:[%s3591_s27 + $0x408] sm:$0xff] %v580_v1 }
  0x53   : > { %583 = vst [vmem:[%s3591_s27 + $0x410] sm:$0xff] %v582_v2  ;;  %585 = vst [vmem:[%s3591_s27 + $0x418] sm:$0xff] %v584_v3  ;;  %v586_v4 = vld [vmem:[%s3583_s26 + $0x840] sm:$0xff]  ;;  %v588_v5 = vld [vmem:[%s3583_s26 + $0x848] sm:$0xff] }
  0x54   : > { %v590_v6 = vld [vmem:[%s3583_s26 + $0x860] sm:$0xff]  ;;  %587 = vst [vmem:[%s3591_s27 + $0x420] sm:$0xff] %v586_v4  ;;  %589 = vst [vmem:[%s3591_s27 + $0x428] sm:$0xff] %v588_v5  ;;  %v592_v7 = vld [vmem:[%s3583_s26 + $0x868] sm:$0xff] }
  0x55   : > { %591 = vst [vmem:[%s3591_s27 + $0x430] sm:$0xff] %v590_v6  ;;  %v594_v8 = vld [vmem:[%s3583_s26 + $0x880] sm:$0xff]  ;;  %v596_v9 = vld [vmem:[%s3583_s26 + $0x888] sm:$0xff]  ;;  %593 = vst [vmem:[%s3591_s27 + $0x438] sm:$0xff] %v592_v7 }
  0x56   : > { %595 = vst [vmem:[%s3591_s27 + $0x440] sm:$0xff] %v594_v8  ;;  %597 = vst [vmem:[%s3591_s27 + $0x448] sm:$0xff] %v596_v9  ;;  %v598_v10 = vld [vmem:[%s3583_s26 + $0x8a0] sm:$0xff]  ;;  %v600_v11 = vld [vmem:[%s3583_s26 + $0x8a8] sm:$0xff] }
  0x57   : > { %v602_v12 = vld [vmem:[%s3583_s26 + $0x8c0] sm:$0xff]  ;;  %599 = vst [vmem:[%s3591_s27 + $0x450] sm:$0xff] %v598_v10  ;;  %601 = vst [vmem:[%s3591_s27 + $0x458] sm:$0xff] %v600_v11  ;;  %v604_v13 = vld [vmem:[%s3583_s26 + $0x8c8] sm:$0xff] }
  0x58   : > { %603 = vst [vmem:[%s3591_s27 + $0x460] sm:$0xff] %v602_v12  ;;  %v606_v14 = vld [vmem:[%s3583_s26 + $0x8e0] sm:$0xff]  ;;  %v608_v15 = vld [vmem:[%s3583_s26 + $0x8e8] sm:$0xff]  ;;  %605 = vst [vmem:[%s3591_s27 + $0x468] sm:$0xff] %v604_v13 }
  0x59   : > { %607 = vst [vmem:[%s3591_s27 + $0x470] sm:$0xff] %v606_v14  ;;  %609 = vst [vmem:[%s3591_s27 + $0x478] sm:$0xff] %v608_v15  ;;  %v610_v16 = vld [vmem:[%s3583_s26 + $0x900] sm:$0xff]  ;;  %v612_v17 = vld [vmem:[%s3583_s26 + $0x908] sm:$0xff] }
  0x5a   : > { %v614_v18 = vld [vmem:[%s3583_s26 + $0x920] sm:$0xff]  ;;  %611 = vst [vmem:[%s3591_s27 + $0x480] sm:$0xff] %v610_v16  ;;  %613 = vst [vmem:[%s3591_s27 + $0x488] sm:$0xff] %v612_v17  ;;  %v616_v19 = vld [vmem:[%s3583_s26 + $0x928] sm:$0xff] }
  0x5b   : > { %615 = vst [vmem:[%s3591_s27 + $0x490] sm:$0xff] %v614_v18  ;;  %v618_v20 = vld [vmem:[%s3583_s26 + $0x940] sm:$0xff]  ;;  %v620_v21 = vld [vmem:[%s3583_s26 + $0x948] sm:$0xff]  ;;  %617 = vst [vmem:[%s3591_s27 + $0x498] sm:$0xff] %v616_v19 }
  0x5c   : > { %619 = vst [vmem:[%s3591_s27 + $0x4a0] sm:$0xff] %v618_v20  ;;  %621 = vst [vmem:[%s3591_s27 + $0x4a8] sm:$0xff] %v620_v21  ;;  %v622_v22 = vld [vmem:[%s3583_s26 + $0x960] sm:$0xff]  ;;  %v624_v23 = vld [vmem:[%s3583_s26 + $0x968] sm:$0xff] }
  0x5d   : > { %v626_v24 = vld [vmem:[%s3583_s26 + $0x980] sm:$0xff]  ;;  %623 = vst [vmem:[%s3591_s27 + $0x4b0] sm:$0xff] %v622_v22  ;;  %625 = vst [vmem:[%s3591_s27 + $0x4b8] sm:$0xff] %v624_v23  ;;  %v628_v25 = vld [vmem:[%s3583_s26 + $0x988] sm:$0xff] }
  0x5e   : > { %627 = vst [vmem:[%s3591_s27 + $0x4c0] sm:$0xff] %v626_v24  ;;  %v630_v26 = vld [vmem:[%s3583_s26 + $0x9a0] sm:$0xff]  ;;  %v632_v27 = vld [vmem:[%s3583_s26 + $0x9a8] sm:$0xff]  ;;  %629 = vst [vmem:[%s3591_s27 + $0x4c8] sm:$0xff] %v628_v25 }
  0x5f   : > { %631 = vst [vmem:[%s3591_s27 + $0x4d0] sm:$0xff] %v630_v26  ;;  %633 = vst [vmem:[%s3591_s27 + $0x4d8] sm:$0xff] %v632_v27  ;;  %v634_v28 = vld [vmem:[%s3583_s26 + $0x9c0] sm:$0xff]  ;;  %v636_v29 = vld [vmem:[%s3583_s26 + $0x9c8] sm:$0xff] }
  0x60   : > { %v638_v30 = vld [vmem:[%s3583_s26 + $0x9e0] sm:$0xff]  ;;  %635 = vst [vmem:[%s3591_s27 + $0x4e0] sm:$0xff] %v634_v28  ;;  %637 = vst [vmem:[%s3591_s27 + $0x4e8] sm:$0xff] %v636_v29  ;;  %v640_v31 = vld [vmem:[%s3583_s26 + $0x9e8] sm:$0xff] }
  0x61   : > { %639 = vst [vmem:[%s3591_s27 + $0x4f0] sm:$0xff] %v638_v30  ;;  %v642_v32 = vld [vmem:[%s3583_s26 + $0xa00] sm:$0xff]  ;;  %v644_v33 = vld [vmem:[%s3583_s26 + $0xa08] sm:$0xff]  ;;  %641 = vst [vmem:[%s3591_s27 + $0x4f8] sm:$0xff] %v640_v31 }
  0x62   : > { %643 = vst [vmem:[%s3591_s27 + $0x500] sm:$0xff] %v642_v32  ;;  %645 = vst [vmem:[%s3591_s27 + $0x508] sm:$0xff] %v644_v33  ;;  %v646_v34 = vld [vmem:[%s3583_s26 + $0xa20] sm:$0xff]  ;;  %v648_v35 = vld [vmem:[%s3583_s26 + $0xa28] sm:$0xff] }
  0x63   : > { %v650_v36 = vld [vmem:[%s3583_s26 + $0xa40] sm:$0xff]  ;;  %647 = vst [vmem:[%s3591_s27 + $0x510] sm:$0xff] %v646_v34  ;;  %649 = vst [vmem:[%s3591_s27 + $0x518] sm:$0xff] %v648_v35  ;;  %v652_v37 = vld [vmem:[%s3583_s26 + $0xa48] sm:$0xff] }
  0x64   : > { %651 = vst [vmem:[%s3591_s27 + $0x520] sm:$0xff] %v650_v36  ;;  %v654_v38 = vld [vmem:[%s3583_s26 + $0xa60] sm:$0xff]  ;;  %v656_v39 = vld [vmem:[%s3583_s26 + $0xa68] sm:$0xff]  ;;  %653 = vst [vmem:[%s3591_s27 + $0x528] sm:$0xff] %v652_v37 }
  0x65   : > { %655 = vst [vmem:[%s3591_s27 + $0x530] sm:$0xff] %v654_v38  ;;  %657 = vst [vmem:[%s3591_s27 + $0x538] sm:$0xff] %v656_v39  ;;  %v658_v40 = vld [vmem:[%s3583_s26 + $0xa80] sm:$0xff]  ;;  %v660_v41 = vld [vmem:[%s3583_s26 + $0xa88] sm:$0xff] }
  0x66   : > { %v662_v42 = vld [vmem:[%s3583_s26 + $0xaa0] sm:$0xff]  ;;  %659 = vst [vmem:[%s3591_s27 + $0x540] sm:$0xff] %v658_v40  ;;  %661 = vst [vmem:[%s3591_s27 + $0x548] sm:$0xff] %v660_v41  ;;  %v664_v43 = vld [vmem:[%s3583_s26 + $0xaa8] sm:$0xff] }
  0x67   : > { %663 = vst [vmem:[%s3591_s27 + $0x550] sm:$0xff] %v662_v42  ;;  %v666_v44 = vld [vmem:[%s3583_s26 + $0xac0] sm:$0xff]  ;;  %v668_v45 = vld [vmem:[%s3583_s26 + $0xac8] sm:$0xff]  ;;  %665 = vst [vmem:[%s3591_s27 + $0x558] sm:$0xff] %v664_v43 }
  0x68   : > { %667 = vst [vmem:[%s3591_s27 + $0x560] sm:$0xff] %v666_v44  ;;  %669 = vst [vmem:[%s3591_s27 + $0x568] sm:$0xff] %v668_v45  ;;  %v670_v46 = vld [vmem:[%s3583_s26 + $0xae0] sm:$0xff]  ;;  %v672_v47 = vld [vmem:[%s3583_s26 + $0xae8] sm:$0xff] }
  0x69   : > { %v674_v48 = vld [vmem:[%s3583_s26 + $0xb00] sm:$0xff]  ;;  %671 = vst [vmem:[%s3591_s27 + $0x570] sm:$0xff] %v670_v46  ;;  %673 = vst [vmem:[%s3591_s27 + $0x578] sm:$0xff] %v672_v47  ;;  %v676_v49 = vld [vmem:[%s3583_s26 + $0xb08] sm:$0xff] }
  0x6a   : > { %675 = vst [vmem:[%s3591_s27 + $0x580] sm:$0xff] %v674_v48  ;;  %v678_v50 = vld [vmem:[%s3583_s26 + $0xb20] sm:$0xff]  ;;  %v680_v51 = vld [vmem:[%s3583_s26 + $0xb28] sm:$0xff]  ;;  %677 = vst [vmem:[%s3591_s27 + $0x588] sm:$0xff] %v676_v49 }
  0x6b   : > { %679 = vst [vmem:[%s3591_s27 + $0x590] sm:$0xff] %v678_v50  ;;  %681 = vst [vmem:[%s3591_s27 + $0x598] sm:$0xff] %v680_v51  ;;  %v682_v52 = vld [vmem:[%s3583_s26 + $0xb40] sm:$0xff]  ;;  %v684_v53 = vld [vmem:[%s3583_s26 + $0xb48] sm:$0xff] }
  0x6c   : > { %v686_v54 = vld [vmem:[%s3583_s26 + $0xb60] sm:$0xff]  ;;  %683 = vst [vmem:[%s3591_s27 + $0x5a0] sm:$0xff] %v682_v52  ;;  %685 = vst [vmem:[%s3591_s27 + $0x5a8] sm:$0xff] %v684_v53  ;;  %v688_v55 = vld [vmem:[%s3583_s26 + $0xb68] sm:$0xff] }
  0x6d   : > { %687 = vst [vmem:[%s3591_s27 + $0x5b0] sm:$0xff] %v686_v54  ;;  %v690_v56 = vld [vmem:[%s3583_s26 + $0xb80] sm:$0xff]  ;;  %v692_v57 = vld [vmem:[%s3583_s26 + $0xb88] sm:$0xff]  ;;  %689 = vst [vmem:[%s3591_s27 + $0x5b8] sm:$0xff] %v688_v55 }
  0x6e   : > { %691 = vst [vmem:[%s3591_s27 + $0x5c0] sm:$0xff] %v690_v56  ;;  %693 = vst [vmem:[%s3591_s27 + $0x5c8] sm:$0xff] %v692_v57  ;;  %v694_v58 = vld [vmem:[%s3583_s26 + $0xba0] sm:$0xff]  ;;  %v696_v59 = vld [vmem:[%s3583_s26 + $0xba8] sm:$0xff] }
  0x6f   : > { %v698_v60 = vld [vmem:[%s3583_s26 + $0xbc0] sm:$0xff]  ;;  %695 = vst [vmem:[%s3591_s27 + $0x5d0] sm:$0xff] %v694_v58  ;;  %697 = vst [vmem:[%s3591_s27 + $0x5d8] sm:$0xff] %v696_v59  ;;  %v700_v61 = vld [vmem:[%s3583_s26 + $0xbc8] sm:$0xff] }
  0x70   : > { %699 = vst [vmem:[%s3591_s27 + $0x5e0] sm:$0xff] %v698_v60  ;;  %v702_v62 = vld [vmem:[%s3583_s26 + $0xbe0] sm:$0xff]  ;;  %v704_v63 = vld [vmem:[%s3583_s26 + $0xbe8] sm:$0xff]  ;;  %701 = vst [vmem:[%s3591_s27 + $0x5e8] sm:$0xff] %v700_v61 }
  0x71   : > { %703 = vst [vmem:[%s3591_s27 + $0x5f0] sm:$0xff] %v702_v62  ;;  %705 = vst [vmem:[%s3591_s27 + $0x5f8] sm:$0xff] %v704_v63 }
  0x72 PF: > { %p2732_p5 = scmp.ge.s32.totalorder %s3486_s15, 1  ;;  %p719_p6 = scmp.lt.s32.totalorder %s3486_s15, 3 }
  0x74   : > { %p720_p7 = pnand %p2732_p5, %p719_p6 }
  0x75   : > { %s726_s28 = sand.u32 (!%p720_p7), 1, %s3478_s13   ;;  %s2733_s29 = sshll.u32 (!%p720_p7), %s3563_s16, 6 }
  0x76   : > { %723 = sbr.rel (%p720_p7) target bundleno = 1501 (0x5dd), region = 79  ;;  %p765_p8 = scmp.lt.s32.totalorder (!%p720_p7), %s2733_s29, 127 }
  0x77   : > { %s3135_s30 = smul.u32 (!%p720_p7), 1536, %s726_s28  ;;  %p2735_p9 = scmp.ne.s32.totalorder (!%p720_p7), %s3563_s16, 0 }
  0x79   : > { %s3980_s21 = scalar_lea.vmem (!%p720_p7), [#allocation3], %s3135_s30 }
  0x7d   : > { %s4324_s29 = smov (!%p765_p8, %s2733_s29), 127  ;;  %773 = sbr.rel (%p2735_p9) target bundleno = 132 (0x84), region = 87 }
  0x7e   : > { %s2734_s11 = sshll.u32 %s4324_s29, 3  ;;  %vm774_vm0 = vcmask (!%p2735_p9), 261120   ;;  %v3488_v0 = vmov (!%p2735_p9), 0.0  }
  0x7f   : > { %s3978_s19 = scalar_lea.vmem %s4311_s2, %s2734_s11  ;;  %775 = vst.msk [vmem:[#allocation2] sm:$0xff] (!%p2735_p9), %vm774_vm0, %v3488_v0 }
  0x84 PF: > { %v3164_v1 = vld [vmem:[%s3980_s21 + $0x4] ss:$16 sps:$4 sm:$0xff]   ;;  %v3166_v2 = vld [vmem:[%s3980_s21 + $0xc] ss:$16 sps:$4 sm:$0xff]   ;;  %v3168_v3 = vld [vmem:[%s3980_s21] ss:$16 sps:$4 sm:$0xff]  }
  0x85   : > { %1940 = vmatprep.subr.bf16.mxu0 %v3164_v1  ;;  %v3169_v4 = vld [vmem:[%s3980_s21 + $0x8] ss:$16 sps:$4 sm:$0xff]   ;;  %2063 = vmatprep.subr.bf16.mxu1 %v3166_v2  ;;  %v3170_v5 = vld [vmem:[%s3980_s21 + $0x24] ss:$16 sps:$4 sm:$0xff]   ;;  %v3172_v6 = vld [vmem:[%s3980_s21 + $0x2c] ss:$16 sps:$4 sm:$0xff]  }
  0x86   : > { %1941 = vmatpush1.bf16.msra.mxu0 %v3168_v3  ;;  %2064 = vmatpush1.bf16.msra.mxu1 %v3169_v4  ;;  %v3174_v7 = vld [vmem:[%s3980_s21 + $0x20] ss:$16 sps:$4 sm:$0xff]   ;;  %v3175_v8 = vld [vmem:[%s3980_s21 + $0x28] ss:$16 sps:$4 sm:$0xff]   ;;  %v3176_v9 = vld [vmem:[%s3980_s21 + $0x44] ss:$16 sps:$4 sm:$0xff]  }
  0x87   : > { %1942 = vmatprep.subr.bf16.mxu0 %v3170_v5  ;;  %2065 = vmatprep.subr.bf16.mxu1 %v3172_v6  ;;  %v3178_v10 = vld [vmem:[%s3980_s21 + $0x4c] ss:$16 sps:$4 sm:$0xff]   ;;  %v3180_v11 = vld [vmem:[%s3980_s21 + $0x40] ss:$16 sps:$4 sm:$0xff]   ;;  %v3181_v12 = vld [vmem:[%s3980_s21 + $0x48] ss:$16 sps:$4 sm:$0xff]  }
  0x88   : > { %v3182_v13 = vld [vmem:[%s3980_s21 + $0x64] ss:$16 sps:$4 sm:$0xff]   ;;  %v3184_v14 = vld [vmem:[%s3980_s21 + $0x6c] ss:$16 sps:$4 sm:$0xff]   ;;  %v3186_v15 = vld [vmem:[%s3980_s21 + $0x60] ss:$16 sps:$4 sm:$0xff]  }
  0x89   : > { %v3187_v16 = vld [vmem:[%s3980_s21 + $0x68] ss:$16 sps:$4 sm:$0xff]   ;;  %v3188_v17 = vld [vmem:[%s3980_s21 + $0x84] ss:$16 sps:$4 sm:$0xff]   ;;  %v3190_v18 = vld [vmem:[%s3980_s21 + $0x8c] ss:$16 sps:$4 sm:$0xff]  }
  0x8a   : > { %1943 = vmatpush1.bf16.msra.mxu0 %v3174_v7  ;;  %2066 = vmatpush1.bf16.msra.mxu1 %v3175_v8  ;;  %v3192_v19 = vld [vmem:[%s3980_s21 + $0x80] ss:$16 sps:$4 sm:$0xff]   ;;  %v3193_v20 = vld [vmem:[%s3980_s21 + $0x88] ss:$16 sps:$4 sm:$0xff]   ;;  %v3194_v21 = vld [vmem:[%s3980_s21 + $0xa4] ss:$16 sps:$4 sm:$0xff]  }
  0x8b   : > { %1944 = vmatprep.subr.bf16.mxu0 %v3176_v9  ;;  %2067 = vmatprep.subr.bf16.mxu1 %v3178_v10  ;;  %v3196_v22 = vld [vmem:[%s3980_s21 + $0xac] ss:$16 sps:$4 sm:$0xff]   ;;  %v3198_v23 = vld [vmem:[%s3980_s21 + $0xa0] ss:$16 sps:$4 sm:$0xff]   ;;  %v3199_v24 = vld [vmem:[%s3980_s21 + $0xa8] ss:$16 sps:$4 sm:$0xff]  }
  0x8c   : > { %v3200_v25 = vld [vmem:[%s3980_s21 + $0xc4] ss:$16 sps:$4 sm:$0xff]   ;;  %v3202_v26 = vld [vmem:[%s3980_s21 + $0xcc] ss:$16 sps:$4 sm:$0xff]   ;;  %v3204_v27 = vld [vmem:[%s3980_s21 + $0xc0] ss:$16 sps:$4 sm:$0xff]  }
  0x8d   : > { %v3205_v28 = vld [vmem:[%s3980_s21 + $0xc8] ss:$16 sps:$4 sm:$0xff]   ;;  %v3206_v29 = vld [vmem:[%s3980_s21 + $0xe4] ss:$16 sps:$4 sm:$0xff]   ;;  %v3208_v30 = vld [vmem:[%s3980_s21 + $0xec] ss:$16 sps:$4 sm:$0xff]  }
  0x8e   : > { %1945 = vmatpush1.bf16.msra.mxu0 %v3180_v11  ;;  %2068 = vmatpush1.bf16.msra.mxu1 %v3181_v12  ;;  %v3210_v31 = vld [vmem:[%s3980_s21 + $0xe0] ss:$16 sps:$4 sm:$0xff]   ;;  %v3211_v32 = vld [vmem:[%s3980_s21 + $0xe8] ss:$16 sps:$4 sm:$0xff]   ;;  %v3212_v33 = vld [vmem:[%s3980_s21 + $0x104] ss:$16 sps:$4 sm:$0xff]  }
  0x8f   : > { %1946 = vmatprep.subr.bf16.mxu0 %v3182_v13  ;;  %2069 = vmatprep.subr.bf16.mxu1 %v3184_v14  ;;  %v3214_v34 = vld [vmem:[%s3980_s21 + $0x10c] ss:$16 sps:$4 sm:$0xff]   ;;  %v3216_v35 = vld [vmem:[%s3980_s21 + $0x100] ss:$16 sps:$4 sm:$0xff]   ;;  %v3217_v36 = vld [vmem:[%s3980_s21 + $0x108] ss:$16 sps:$4 sm:$0xff]  }
  0x90   : > { %v3218_v37 = vld [vmem:[%s3980_s21 + $0x124] ss:$16 sps:$4 sm:$0xff]   ;;  %v3220_v38 = vld [vmem:[%s3980_s21 + $0x12c] ss:$16 sps:$4 sm:$0xff]   ;;  %v3222_v39 = vld [vmem:[%s3980_s21 + $0x120] ss:$16 sps:$4 sm:$0xff]  }
  0x91   : > { %v3223_v40 = vld [vmem:[%s3980_s21 + $0x128] ss:$16 sps:$4 sm:$0xff]   ;;  %v3224_v41 = vld [vmem:[%s3980_s21 + $0x144] ss:$16 sps:$4 sm:$0xff]   ;;  %v3226_v42 = vld [vmem:[%s3980_s21 + $0x14c] ss:$16 sps:$4 sm:$0xff]  }
  0x92   : > { %1947 = vmatpush1.bf16.msra.mxu0 %v3186_v15  ;;  %2070 = vmatpush1.bf16.msra.mxu1 %v3187_v16  ;;  %v3228_v43 = vld [vmem:[%s3980_s21 + $0x140] ss:$16 sps:$4 sm:$0xff]   ;;  %v3229_v44 = vld [vmem:[%s3980_s21 + $0x148] ss:$16 sps:$4 sm:$0xff]   ;;  %v3230_v45 = vld [vmem:[%s3980_s21 + $0x164] ss:$16 sps:$4 sm:$0xff]  }
  0x93   : > { %1948 = vmatprep.subr.bf16.mxu0 %v3188_v17  ;;  %2071 = vmatprep.subr.bf16.mxu1 %v3190_v18  ;;  %v3232_v46 = vld [vmem:[%s3980_s21 + $0x16c] ss:$16 sps:$4 sm:$0xff]   ;;  %v777_v47 = vld [vmem:[%s4309_s0 + $0x8] sm:$0xff]  ;;  %v3235_v50 = vld [vmem:[%s3980_s21 + $0x168] ss:$16 sps:$4 sm:$0xff]   ;;  %vm2392_vm1 = vcmask 261120  }
  0x94   : > { %v3234_v48 = vld [vmem:[%s3980_s21 + $0x160] ss:$16 sps:$4 sm:$0xff]   ;;  %v783_v49 = vpack.c.bf16 %v777_v47, %v777_v47  ;;  %v3236_v51 = vld [vmem:[%s3980_s21 + $0x184] ss:$16 sps:$4 sm:$0xff]   ;;  %v3238_v52 = vld [vmem:[%s3980_s21 + $0x18c] ss:$16 sps:$4 sm:$0xff]  }
  0x95   : > { %v3240_v53 = vld [vmem:[%s3980_s21 + $0x180] ss:$16 sps:$4 sm:$0xff]   ;;  %v3241_v54 = vld [vmem:[%s3980_s21 + $0x188] ss:$16 sps:$4 sm:$0xff]   ;;  %v3242_v55 = vld [vmem:[%s3980_s21 + $0x1a4] ss:$16 sps:$4 sm:$0xff]  }
  0x96   : > { %1949 = vmatpush1.bf16.msra.mxu0 %v3192_v19  ;;  %2072 = vmatpush1.bf16.msra.mxu1 %v3193_v20  ;;  %v3244_v56 = vld [vmem:[%s3980_s21 + $0x1ac] ss:$16 sps:$4 sm:$0xff]   ;;  %v3246_v57 = vld [vmem:[%s3980_s21 + $0x1a0] ss:$16 sps:$4 sm:$0xff]   ;;  %v3247_v58 = vld [vmem:[%s3980_s21 + $0x1a8] ss:$16 sps:$4 sm:$0xff]  }
  0x97   : > { %1950 = vmatprep.subr.bf16.mxu0 %v3194_v21  ;;  %2073 = vmatprep.subr.bf16.mxu1 %v3196_v22  ;;  %v3248_v59 = vld [vmem:[%s3980_s21 + $0x1c4] ss:$16 sps:$4 sm:$0xff]   ;;  %v3250_v60 = vld [vmem:[%s3980_s21 + $0x1cc] ss:$16 sps:$4 sm:$0xff]   ;;  %v3252_v61 = vld [vmem:[%s3980_s21 + $0x1c0] ss:$16 sps:$4 sm:$0xff]  }
  0x98   : > { %1972 = vmatprep.mubr.bf16.mxu0 %v783_v49  ;;  %2095 = vmatprep.mubr.bf16.mxu1 %v783_v49  ;;  %v3253_v62 = vld [vmem:[%s3980_s21 + $0x1c8] ss:$16 sps:$4 sm:$0xff]   ;;  %v3254_v63 = vld [vmem:[%s3980_s21 + $0x1e4] ss:$16 sps:$4 sm:$0xff]   ;;  %v3256_v0 = vld [vmem:[%s3980_s21 + $0x1ec] ss:$16 sps:$4 sm:$0xff]  }
  0x99   : > { %v3258_v1 = vld [vmem:[%s3980_s21 + $0x1e0] ss:$16 sps:$4 sm:$0xff]   ;;  %v3259_v2 = vld [vmem:[%s3980_s21 + $0x1e8] ss:$16 sps:$4 sm:$0xff]   ;;  %v3262_v4 = vld [vmem:[%s3980_s21 + $0x204] ss:$16 sps:$4 sm:$0xff]  }
  0x9a   : > { %1951 = vmatpush1.bf16.msra.mxu0 %v3198_v23  ;;  %2074 = vmatpush1.bf16.msra.mxu1 %v3199_v24  ;;  %v776_v3 = vld [vmem:[%s4309_s0] sm:$0xff]  ;;  %v3260_v7 = vld [vmem:[%s3980_s21 + $0x200] ss:$16 sps:$4 sm:$0xff]   ;;  %v3268_v9 = vld [vmem:[%s3980_s21 + $0x224] ss:$16 sps:$4 sm:$0xff]   ;;  %p2928_p10 = scmp.ne.s32.totalorder %s3563_s16, 1 }
  0x9b   : > { %1952 = vmatprep.subr.bf16.mxu0 %v3200_v25  ;;  %2075 = vmatprep.subr.bf16.mxu1 %v3202_v26  ;;  %v3265_v5 = vld [vmem:[%s3980_s21 + $0x20c] ss:$16 sps:$4 sm:$0xff]   ;;  %v782_v6 = vpack.c.bf16 %v776_v3, %v776_v3  ;;  %v3263_v8 = vld [vmem:[%s3980_s21 + $0x208] ss:$16 sps:$4 sm:$0xff]   ;;  %v3266_v11 = vld [vmem:[%s3980_s21 + $0x220] ss:$16 sps:$4 sm:$0xff]  }
  0x9c   : > { %v3271_v10 = vld [vmem:[%s3980_s21 + $0x22c] ss:$16 sps:$4 sm:$0xff]   ;;  %v3269_v12 = vld [vmem:[%s3980_s21 + $0x228] ss:$16 sps:$4 sm:$0xff]   ;;  %v3274_v13 = vld [vmem:[%s3980_s21 + $0x244] ss:$16 sps:$4 sm:$0xff]  }
  0x9d   : > { %v3277_v14 = vld [vmem:[%s3980_s21 + $0x24c] ss:$16 sps:$4 sm:$0xff]   ;;  %v3272_v15 = vld [vmem:[%s3980_s21 + $0x240] ss:$16 sps:$4 sm:$0xff]   ;;  %v3275_v16 = vld [vmem:[%s3980_s21 + $0x248] ss:$16 sps:$4 sm:$0xff]  }
  0x9e   : > { %1953 = vmatpush1.bf16.msra.mxu0 %v3204_v27  ;;  %2076 = vmatpush1.bf16.msra.mxu1 %v3205_v28  ;;  %v3280_v17 = vld [vmem:[%s3980_s21 + $0x264] ss:$16 sps:$4 sm:$0xff]   ;;  %v3283_v18 = vld [vmem:[%s3980_s21 + $0x26c] ss:$16 sps:$4 sm:$0xff]   ;;  %v3278_v19 = vld [vmem:[%s3980_s21 + $0x260] ss:$16 sps:$4 sm:$0xff]  }
  0x9f   : > { %1954 = vmatprep.subr.bf16.mxu0 %v3206_v29  ;;  %2077 = vmatprep.subr.bf16.mxu1 %v3208_v30  ;;  %v3281_v20 = vld [vmem:[%s3980_s21 + $0x268] ss:$16 sps:$4 sm:$0xff]   ;;  %v3286_v21 = vld [vmem:[%s3980_s21 + $0x284] ss:$16 sps:$4 sm:$0xff]   ;;  %v3289_v22 = vld [vmem:[%s3980_s21 + $0x28c] ss:$16 sps:$4 sm:$0xff]  }
  0xa0   : > { %v3284_v23 = vld [vmem:[%s3980_s21 + $0x280] ss:$16 sps:$4 sm:$0xff]   ;;  %v3287_v24 = vld [vmem:[%s3980_s21 + $0x288] ss:$16 sps:$4 sm:$0xff]   ;;  %v3292_v25 = vld [vmem:[%s3980_s21 + $0x2a4] ss:$16 sps:$4 sm:$0xff]  }
  0xa1   : > { %v3295_v26 = vld [vmem:[%s3980_s21 + $0x2ac] ss:$16 sps:$4 sm:$0xff]   ;;  %v3290_v27 = vld [vmem:[%s3980_s21 + $0x2a0] ss:$16 sps:$4 sm:$0xff]   ;;  %v3293_v28 = vld [vmem:[%s3980_s21 + $0x2a8] ss:$16 sps:$4 sm:$0xff]  }
  0xa2   : > { %1955 = vmatpush1.bf16.msra.mxu0 %v3210_v31  ;;  %2078 = vmatpush1.bf16.msra.mxu1 %v3211_v32  ;;  %v3298_v29 = vld [vmem:[%s3980_s21 + $0x2c4] ss:$16 sps:$4 sm:$0xff]   ;;  %v3301_v30 = vld [vmem:[%s3980_s21 + $0x2cc] ss:$16 sps:$4 sm:$0xff]   ;;  %v3296_v32 = vld [vmem:[%s3980_s21 + $0x2c0] ss:$16 sps:$4 sm:$0xff]  }
  0xa3   : > { %1956 = vmatprep.subr.bf16.mxu0 %v3212_v33  ;;  %2079 = vmatprep.subr.bf16.mxu1 %v3214_v34  ;;  %v779_v31 = vld [vmem:[%s4309_s0 + $0x18] sm:$0xff]  ;;  %v3299_v34 = vld [vmem:[%s3980_s21 + $0x2c8] ss:$16 sps:$4 sm:$0xff]   ;;  %vm3490_vm2 = vmmov (!%p2928_p10), 0   ;;  %vm2516_vm3 = vcmask (!%p2928_p10), 130048   ;;  %vm2606_vm4 = vcmask (!%p2928_p10), 64512  }
  0xa4   : > { %v785_v33 = vpack.c.bf16 %v779_v31, %v779_v31  ;;  %v3322_v47 = vld [vmem:[%s3980_s21 + $0x344] ss:$16 sps:$4 sm:$0xff]   ;;  %v3320_v49 = vld [vmem:[%s3980_s21 + $0x340] ss:$16 sps:$4 sm:$0xff]  }
  0xa5   : > { %v3352_v3 = vld [vmem:[%s3980_s21 + $0x3e4] ss:$16 sps:$4 sm:$0xff]  }
  0xa6   : > { %1957 = vmatpush1.bf16.msra.mxu0 %v3216_v35  ;;  %2080 = vmatpush1.bf16.msra.mxu1 %v3217_v36  ;;  %v3304_v35 = vld [vmem:[%s3980_s21 + $0x2e4] ss:$16 sps:$4 sm:$0xff]   ;;  %v3307_v36 = vld [vmem:[%s3980_s21 + $0x2ec] ss:$16 sps:$4 sm:$0xff]  }
  0xa7   : > { %1958 = vmatprep.subr.bf16.mxu0 %v3218_v37  ;;  %2081 = vmatprep.subr.bf16.mxu1 %v3220_v38  ;;  %v3302_v37 = vld [vmem:[%s3980_s21 + $0x2e0] ss:$16 sps:$4 sm:$0xff]   ;;  %v3305_v38 = vld [vmem:[%s3980_s21 + $0x2e8] ss:$16 sps:$4 sm:$0xff]   ;;  %v3388_v31 = vld [vmem:[%s3980_s21 + $0x4a4] ss:$16 sps:$4 sm:$0xff]  }
  0xaa   : > { %1959 = vmatpush1.bf16.msra.mxu0 %v3222_v39  ;;  %2082 = vmatpush1.bf16.msra.mxu1 %v3223_v40  ;;  %v3310_v39 = vld [vmem:[%s3980_s21 + $0x304] ss:$16 sps:$4 sm:$0xff]   ;;  %v3313_v40 = vld [vmem:[%s3980_s21 + $0x30c] ss:$16 sps:$4 sm:$0xff]  }
  0xab   : > { %1960 = vmatprep.subr.bf16.mxu0 %v3224_v41  ;;  %2083 = vmatprep.subr.bf16.mxu1 %v3226_v42  ;;  %v3308_v41 = vld [vmem:[%s3980_s21 + $0x300] ss:$16 sps:$4 sm:$0xff]   ;;  %v3311_v42 = vld [vmem:[%s3980_s21 + $0x308] ss:$16 sps:$4 sm:$0xff]  }
  0xae   : > { %1961 = vmatpush1.bf16.msra.mxu0 %v3228_v43  ;;  %2084 = vmatpush1.bf16.msra.mxu1 %v3229_v44  ;;  %v3316_v43 = vld [vmem:[%s3980_s21 + $0x324] ss:$16 sps:$4 sm:$0xff]   ;;  %v3319_v44 = vld [vmem:[%s3980_s21 + $0x32c] ss:$16 sps:$4 sm:$0xff]  }
  0xaf   : > { %1962 = vmatprep.subr.bf16.mxu0 %v3230_v45  ;;  %2085 = vmatprep.subr.bf16.mxu1 %v3232_v46  ;;  %v3314_v45 = vld [vmem:[%s3980_s21 + $0x320] ss:$16 sps:$4 sm:$0xff]   ;;  %v3317_v46 = vld [vmem:[%s3980_s21 + $0x328] ss:$16 sps:$4 sm:$0xff]  }
  0xb2   : > { %1963 = vmatpush1.bf16.msra.mxu0 %v3234_v48  ;;  %2086 = vmatpush1.bf16.msra.mxu1 %v3235_v50  ;;  %v3325_v48 = vld [vmem:[%s3980_s21 + $0x34c] ss:$16 sps:$4 sm:$0xff]   ;;  %v3323_v50 = vld [vmem:[%s3980_s21 + $0x348] ss:$16 sps:$4 sm:$0xff]  }
  0xb3   : > { %1964 = vmatprep.subr.bf16.mxu0 %v3236_v51  ;;  %2087 = vmatprep.subr.bf16.mxu1 %v3238_v52  ;;  %v3328_v51 = vld [vmem:[%s3980_s21 + $0x364] ss:$16 sps:$4 sm:$0xff]   ;;  %v3331_v52 = vld [vmem:[%s3980_s21 + $0x36c] ss:$16 sps:$4 sm:$0xff]  }
  0xb6   : > { %1965 = vmatpush1.bf16.msra.mxu0 %v3240_v53  ;;  %2088 = vmatpush1.bf16.msra.mxu1 %v3241_v54  ;;  %v3326_v53 = vld [vmem:[%s3980_s21 + $0x360] ss:$16 sps:$4 sm:$0xff]   ;;  %v3329_v54 = vld [vmem:[%s3980_s21 + $0x368] ss:$16 sps:$4 sm:$0xff]  }
  0xb7   : > { %1966 = vmatprep.subr.bf16.mxu0 %v3242_v55  ;;  %2089 = vmatprep.subr.bf16.mxu1 %v3244_v56  ;;  %v3334_v55 = vld [vmem:[%s3980_s21 + $0x384] ss:$16 sps:$4 sm:$0xff]   ;;  %v3337_v56 = vld [vmem:[%s3980_s21 + $0x38c] ss:$16 sps:$4 sm:$0xff]  }
  0xba   : > { %1967 = vmatpush1.bf16.msra.mxu0 %v3246_v57  ;;  %2090 = vmatpush1.bf16.msra.mxu1 %v3247_v58  ;;  %v3332_v57 = vld [vmem:[%s3980_s21 + $0x380] ss:$16 sps:$4 sm:$0xff]   ;;  %v3335_v58 = vld [vmem:[%s3980_s21 + $0x388] ss:$16 sps:$4 sm:$0xff]  }
  0xbb   : > { %1968 = vmatprep.subr.bf16.mxu0 %v3248_v59  ;;  %2091 = vmatprep.subr.bf16.mxu1 %v3250_v60  ;;  %v3340_v59 = vld [vmem:[%s3980_s21 + $0x3a4] ss:$16 sps:$4 sm:$0xff]   ;;  %v3343_v60 = vld [vmem:[%s3980_s21 + $0x3ac] ss:$16 sps:$4 sm:$0xff]  }
  0xbe   : > { %1969 = vmatpush1.bf16.msra.mxu0 %v3252_v61  ;;  %2092 = vmatpush1.bf16.msra.mxu1 %v3253_v62  ;;  %v3338_v61 = vld [vmem:[%s3980_s21 + $0x3a0] ss:$16 sps:$4 sm:$0xff]   ;;  %v3341_v62 = vld [vmem:[%s3980_s21 + $0x3a8] ss:$16 sps:$4 sm:$0xff]  }
  0xbf   : > { %1970 = vmatprep.subr.bf16.mxu0 %v3254_v63  ;;  %2093 = vmatprep.subr.bf16.mxu1 %v3256_v0  ;;  %v3346_v63 = vld [vmem:[%s3980_s21 + $0x3c4] ss:$16 sps:$4 sm:$0xff]   ;;  %v3349_v0 = vld [vmem:[%s3980_s21 + $0x3cc] ss:$16 sps:$4 sm:$0xff]  }
  0xc2   : > { %1971 = vmatpush1.bf16.msra.mxu0 %v3258_v1  ;;  %2094 = vmatpush1.bf16.msra.mxu1 %v3259_v2  ;;  %v3344_v1 = vld [vmem:[%s3980_s21 + $0x3c0] ss:$16 sps:$4 sm:$0xff]   ;;  %v3347_v2 = vld [vmem:[%s3980_s21 + $0x3c8] ss:$16 sps:$4 sm:$0xff]  }
  0xc3   : > { %1981 = vmatprep.subr.bf16.mxu0 %v3262_v4  ;;  %2104 = vmatprep.subr.bf16.mxu1 %v3265_v5  ;;  %v3355_v4 = vld [vmem:[%s3980_s21 + $0x3ec] ss:$16 sps:$4 sm:$0xff]   ;;  %v3350_v5 = vld [vmem:[%s3980_s21 + $0x3e0] ss:$16 sps:$4 sm:$0xff]  }
  0xc5   : > { %1973 = vmatmul.mubr.bf16.vlgmr.msra.gmra.mrb[0].mxu0 %v782_v6  ;;  %2096 = vmatmul.mubr.bf16.vlgmr.msra.gmra.mrb[0].mxu1 %v782_v6  ;;  %v3353_v6 = vld [vmem:[%s3980_s21 + $0x3e8] ss:$16 sps:$4 sm:$0xff]  }
  0xc6   : > { %1982 = vmatpush1.bf16.msra.mxu0 %v3260_v7  ;;  %2105 = vmatpush1.bf16.msra.mxu1 %v3263_v8  ;;  %v3358_v7 = vld [vmem:[%s3980_s21 + $0x404] ss:$16 sps:$4 sm:$0xff]   ;;  %v778_v8 = vld [vmem:[%s4309_s0 + $0x10] sm:$0xff] }
  0xc7   : > { %1983 = vmatprep.subr.bf16.mxu0 %v3268_v9  ;;  %2106 = vmatprep.subr.bf16.mxu1 %v3271_v10  ;;  %v3361_v9 = vld [vmem:[%s3980_s21 + $0x40c] ss:$16 sps:$4 sm:$0xff]   ;;  %v3356_v10 = vld [vmem:[%s3980_s21 + $0x400] ss:$16 sps:$4 sm:$0xff]  }
  0xc8   : > { %2013 = vmatprep.mubr.bf16.mxu0 %v785_v33  ;;  %2136 = vmatprep.mubr.bf16.mxu1 %v785_v33  ;;  %v3386_v33 = vld [vmem:[%s3980_s21 + $0x4a0] ss:$16 sps:$4 sm:$0xff]  }
  0xca   : > { %1984 = vmatpush1.bf16.msra.mxu0 %v3266_v11  ;;  %2107 = vmatpush1.bf16.msra.mxu1 %v3269_v12  ;;  %v784_v11 = vpack.c.bf16 %v778_v8, %v778_v8  ;;  %v3359_v12 = vld [vmem:[%s3980_s21 + $0x408] ss:$16 sps:$4 sm:$0xff]   ;;  %v3451_v8 = vld [vmem:[%s3980_s21 + $0x5ec] ss:$16 sps:$4 sm:$0xff]  }
  0xcb   : > { %1985 = vmatprep.subr.bf16.mxu0 %v3274_v13  ;;  %2108 = vmatprep.subr.bf16.mxu1 %v3277_v14  ;;  %v3364_v13 = vld [vmem:[%s3980_s21 + $0x424] ss:$16 sps:$4 sm:$0xff]   ;;  %v3367_v14 = vld [vmem:[%s3980_s21 + $0x42c] ss:$16 sps:$4 sm:$0xff]  }
  0xce   : > { %1986 = vmatpush1.bf16.msra.mxu0 %v3272_v15  ;;  %2109 = vmatpush1.bf16.msra.mxu1 %v3275_v16  ;;  %v781_v15 = vld [vmem:[%s4309_s0 + $0x28] sm:$0xff] }
  0xcf   : > { %1987 = vmatprep.subr.bf16.mxu0 %v3280_v17  ;;  %2110 = vmatprep.subr.bf16.mxu1 %v3283_v18  ;;  %v787_v16 = vpack.c.bf16 %v781_v15, %v781_v15  ;;  %v3362_v17 = vld [vmem:[%s3980_s21 + $0x420] ss:$16 sps:$4 sm:$0xff]   ;;  %v3365_v18 = vld [vmem:[%s3980_s21 + $0x428] ss:$16 sps:$4 sm:$0xff]  }
  0xd0   : > { %v780_v15 = vld [vmem:[%s4309_s0 + $0x20] sm:$0xff] }
  0xd2   : > { %1988 = vmatpush1.bf16.msra.mxu0 %v3278_v19  ;;  %2111 = vmatpush1.bf16.msra.mxu1 %v3281_v20  ;;  %v3370_v19 = vld [vmem:[%s3980_s21 + $0x444] ss:$16 sps:$4 sm:$0xff]   ;;  %v3373_v20 = vld [vmem:[%s3980_s21 + $0x44c] ss:$16 sps:$4 sm:$0xff]  }
  0xd3   : > { %1989 = vmatprep.subr.bf16.mxu0 %v3286_v21  ;;  %2112 = vmatprep.subr.bf16.mxu1 %v3289_v22  ;;  %v3368_v21 = vld [vmem:[%s3980_s21 + $0x440] ss:$16 sps:$4 sm:$0xff]   ;;  %v3371_v22 = vld [vmem:[%s3980_s21 + $0x448] ss:$16 sps:$4 sm:$0xff]  }
  0xd6   : > { %1990 = vmatpush1.bf16.msra.mxu0 %v3284_v23  ;;  %2113 = vmatpush1.bf16.msra.mxu1 %v3287_v24  ;;  %v3376_v23 = vld [vmem:[%s3980_s21 + $0x464] ss:$16 sps:$4 sm:$0xff]   ;;  %v3379_v24 = vld [vmem:[%s3980_s21 + $0x46c] ss:$16 sps:$4 sm:$0xff]  }
  0xd7   : > { %1991 = vmatprep.subr.bf16.mxu0 %v3292_v25  ;;  %2114 = vmatprep.subr.bf16.mxu1 %v3295_v26  ;;  %v3374_v25 = vld [vmem:[%s3980_s21 + $0x460] ss:$16 sps:$4 sm:$0xff]   ;;  %v3377_v26 = vld [vmem:[%s3980_s21 + $0x468] ss:$16 sps:$4 sm:$0xff]  }
  0xda   : > { %1992 = vmatpush1.bf16.msra.mxu0 %v3290_v27  ;;  %2115 = vmatpush1.bf16.msra.mxu1 %v3293_v28  ;;  %v3382_v27 = vld [vmem:[%s3980_s21 + $0x484] ss:$16 sps:$4 sm:$0xff]   ;;  %v3385_v28 = vld [vmem:[%s3980_s21 + $0x48c] ss:$16 sps:$4 sm:$0xff]  }
  0xdb   : > { %1993 = vmatprep.subr.bf16.mxu0 %v3298_v29  ;;  %2116 = vmatprep.subr.bf16.mxu1 %v3301_v30  ;;  %v3380_v29 = vld [vmem:[%s3980_s21 + $0x480] ss:$16 sps:$4 sm:$0xff]   ;;  %v3383_v30 = vld [vmem:[%s3980_s21 + $0x488] ss:$16 sps:$4 sm:$0xff]  }
  0xde   : > { %1994 = vmatpush1.bf16.msra.mxu0 %v3296_v32  ;;  %2117 = vmatpush1.bf16.msra.mxu1 %v3299_v34  ;;  %v3391_v32 = vld [vmem:[%s3980_s21 + $0x4ac] ss:$16 sps:$4 sm:$0xff]   ;;  %v3389_v34 = vld [vmem:[%s3980_s21 + $0x4a8] ss:$16 sps:$4 sm:$0xff]  }
  0xdf   : > { %1995 = vmatprep.subr.bf16.mxu0 %v3304_v35  ;;  %2118 = vmatprep.subr.bf16.mxu1 %v3307_v36  ;;  %v3394_v35 = vld [vmem:[%s3980_s21 + $0x4c4] ss:$16 sps:$4 sm:$0xff]   ;;  %v3397_v36 = vld [vmem:[%s3980_s21 + $0x4cc] ss:$16 sps:$4 sm:$0xff]  }
  0xe2   : > { %1996 = vmatpush1.bf16.msra.mxu0 %v3302_v37  ;;  %2119 = vmatpush1.bf16.msra.mxu1 %v3305_v38  ;;  %v3392_v37 = vld [vmem:[%s3980_s21 + $0x4c0] ss:$16 sps:$4 sm:$0xff]   ;;  %v3395_v38 = vld [vmem:[%s3980_s21 + $0x4c8] ss:$16 sps:$4 sm:$0xff]  }
  0xe3   : > { %1997 = vmatprep.subr.bf16.mxu0 %v3310_v39  ;;  %2120 = vmatprep.subr.bf16.mxu1 %v3313_v40  ;;  %v3400_v39 = vld [vmem:[%s3980_s21 + $0x4e4] ss:$16 sps:$4 sm:$0xff]   ;;  %v3403_v40 = vld [vmem:[%s3980_s21 + $0x4ec] ss:$16 sps:$4 sm:$0xff]  }
  0xe6   : > { %1998 = vmatpush1.bf16.msra.mxu0 %v3308_v41  ;;  %2121 = vmatpush1.bf16.msra.mxu1 %v3311_v42  ;;  %v3398_v41 = vld [vmem:[%s3980_s21 + $0x4e0] ss:$16 sps:$4 sm:$0xff]   ;;  %v3401_v42 = vld [vmem:[%s3980_s21 + $0x4e8] ss:$16 sps:$4 sm:$0xff]  }
  0xe7   : > { %1999 = vmatprep.subr.bf16.mxu0 %v3316_v43  ;;  %2122 = vmatprep.subr.bf16.mxu1 %v3319_v44  ;;  %v3406_v43 = vld [vmem:[%s3980_s21 + $0x504] ss:$16 sps:$4 sm:$0xff]   ;;  %v3409_v44 = vld [vmem:[%s3980_s21 + $0x50c] ss:$16 sps:$4 sm:$0xff]  }
  0xea   : > { %2000 = vmatpush1.bf16.msra.mxu0 %v3314_v45  ;;  %2123 = vmatpush1.bf16.msra.mxu1 %v3317_v46  ;;  %v3404_v45 = vld [vmem:[%s3980_s21 + $0x500] ss:$16 sps:$4 sm:$0xff]   ;;  %v3407_v46 = vld [vmem:[%s3980_s21 + $0x508] ss:$16 sps:$4 sm:$0xff]  }
  0xeb   : > { %2001 = vmatprep.subr.bf16.mxu0 %v3322_v47  ;;  %2124 = vmatprep.subr.bf16.mxu1 %v3325_v48  ;;  %v3412_v47 = vld [vmem:[%s3980_s21 + $0x524] ss:$16 sps:$4 sm:$0xff]   ;;  %v3415_v48 = vld [vmem:[%s3980_s21 + $0x52c] ss:$16 sps:$4 sm:$0xff]  }
  0xee   : > { %2002 = vmatpush1.bf16.msra.mxu0 %v3320_v49  ;;  %2125 = vmatpush1.bf16.msra.mxu1 %v3323_v50  ;;  %v3410_v49 = vld [vmem:[%s3980_s21 + $0x520] ss:$16 sps:$4 sm:$0xff]   ;;  %v3413_v50 = vld [vmem:[%s3980_s21 + $0x528] ss:$16 sps:$4 sm:$0xff]  }
  0xef   : > { %2003 = vmatprep.subr.bf16.mxu0 %v3328_v51  ;;  %2126 = vmatprep.subr.bf16.mxu1 %v3331_v52  ;;  %v3418_v51 = vld [vmem:[%s3980_s21 + $0x544] ss:$16 sps:$4 sm:$0xff]   ;;  %v3421_v52 = vld [vmem:[%s3980_s21 + $0x54c] ss:$16 sps:$4 sm:$0xff]  }
  0xf2   : > { %2004 = vmatpush1.bf16.msra.mxu0 %v3326_v53  ;;  %2127 = vmatpush1.bf16.msra.mxu1 %v3329_v54  ;;  %v3416_v53 = vld [vmem:[%s3980_s21 + $0x540] ss:$16 sps:$4 sm:$0xff]   ;;  %v3419_v54 = vld [vmem:[%s3980_s21 + $0x548] ss:$16 sps:$4 sm:$0xff]  }
  0xf3   : > { %2005 = vmatprep.subr.bf16.mxu0 %v3334_v55  ;;  %2128 = vmatprep.subr.bf16.mxu1 %v3337_v56  ;;  %v3424_v55 = vld [vmem:[%s3980_s21 + $0x564] ss:$16 sps:$4 sm:$0xff]   ;;  %v3427_v56 = vld [vmem:[%s3980_s21 + $0x56c] ss:$16 sps:$4 sm:$0xff]  }
  0xf6   : > { %2006 = vmatpush1.bf16.msra.mxu0 %v3332_v57  ;;  %2129 = vmatpush1.bf16.msra.mxu1 %v3335_v58  ;;  %v3422_v57 = vld [vmem:[%s3980_s21 + $0x560] ss:$16 sps:$4 sm:$0xff]   ;;  %v3425_v58 = vld [vmem:[%s3980_s21 + $0x568] ss:$16 sps:$4 sm:$0xff]  }
  0xf7   : > { %2007 = vmatprep.subr.bf16.mxu0 %v3340_v59  ;;  %2130 = vmatprep.subr.bf16.mxu1 %v3343_v60  ;;  %v3430_v59 = vld [vmem:[%s3980_s21 + $0x584] ss:$16 sps:$4 sm:$0xff]   ;;  %v3433_v60 = vld [vmem:[%s3980_s21 + $0x58c] ss:$16 sps:$4 sm:$0xff]  }
  0xfa   : > { %2008 = vmatpush1.bf16.msra.mxu0 %v3338_v61  ;;  %2131 = vmatpush1.bf16.msra.mxu1 %v3341_v62  ;;  %v3428_v61 = vld [vmem:[%s3980_s21 + $0x580] ss:$16 sps:$4 sm:$0xff]   ;;  %v3431_v62 = vld [vmem:[%s3980_s21 + $0x588] ss:$16 sps:$4 sm:$0xff]  }
  0xfb   : > { %2009 = vmatprep.subr.bf16.mxu0 %v3346_v63  ;;  %2132 = vmatprep.subr.bf16.mxu1 %v3349_v0  ;;  %v3436_v63 = vld [vmem:[%s3980_s21 + $0x5a4] ss:$16 sps:$4 sm:$0xff]   ;;  %v3439_v0 = vld [vmem:[%s3980_s21 + $0x5ac] ss:$16 sps:$4 sm:$0xff]  }
  0xfe   : > { %2010 = vmatpush1.bf16.msra.mxu0 %v3344_v1  ;;  %2133 = vmatpush1.bf16.msra.mxu1 %v3347_v2  ;;  %v3434_v1 = vld [vmem:[%s3980_s21 + $0x5a0] ss:$16 sps:$4 sm:$0xff]   ;;  %v3437_v2 = vld [vmem:[%s3980_s21 + $0x5a8] ss:$16 sps:$4 sm:$0xff]  }
  0xff   : > { %2011 = vmatprep.subr.bf16.mxu0 %v3352_v3  ;;  %2134 = vmatprep.subr.bf16.mxu1 %v3355_v4  ;;  %v3442_v3 = vld [vmem:[%s3980_s21 + $0x5c4] ss:$16 sps:$4 sm:$0xff]   ;;  %v3445_v4 = vld [vmem:[%s3980_s21 + $0x5cc] ss:$16 sps:$4 sm:$0xff]  }
 0x102   : > { %2012 = vmatpush1.bf16.msra.mxu0 %v3350_v5  ;;  %2135 = vmatpush1.bf16.msra.mxu1 %v3353_v6  ;;  %v3440_v5 = vld [vmem:[%s3980_s21 + $0x5c0] ss:$16 sps:$4 sm:$0xff]   ;;  %v3443_v6 = vld [vmem:[%s3980_s21 + $0x5c8] ss:$16 sps:$4 sm:$0xff]  }
 0x103   : > { %2022 = vmatprep.subr.bf16.mxu0 %v3358_v7  ;;  %2145 = vmatprep.subr.bf16.mxu1 %v3361_v9  ;;  %v3448_v7 = vld [vmem:[%s3980_s21 + $0x5e4] ss:$16 sps:$4 sm:$0xff]   ;;  %v2203_v9 = vld [vmem:[%s3978_s19 + $0x80] sm:$0xff] }
 0x105   : > { %2014 = vmatmul.mubr.bf16.vlgmr.msra.gmra.mrb[0].mxu0 %v784_v11  ;;  %2137 = vmatmul.mubr.bf16.vlgmr.msra.gmra.mrb[0].mxu1 %v784_v11  ;;  %v2235_v11 = vld [vmem:[%s3978_s19 + $0x180] sm:$0xff] }
 0x106   : > { %2023 = vmatpush1.bf16.msra.mxu0 %v3356_v10  ;;  %2146 = vmatpush1.bf16.msra.mxu1 %v3359_v12  ;;  %v2204_v10 = vld [vmem:[%s3978_s19 + $0x88] sm:$0xff] }
 0x107   : > { %2024 = vmatprep.subr.bf16.mxu0 %v3364_v13  ;;  %2147 = vmatprep.subr.bf16.mxu1 %v3367_v14  ;;  %v2236_v12 = vld [vmem:[%s3978_s19 + $0x188] sm:$0xff]  ;;  %v3449_v14 = vld [vmem:[%s3980_s21 + $0x5e8] ss:$16 sps:$4 sm:$0xff]  }
 0x108   : > { %2054 = vmatprep.mubr.bf16.mxu0 %v787_v16  ;;  %2177 = vmatprep.mubr.bf16.mxu1 %v787_v16  ;;  %v3446_v13 = vld [vmem:[%s3980_s21 + $0x5e0] ss:$16 sps:$4 sm:$0xff]   ;;  %v2187_v16 = vld [vmem:[%s3978_s19] sm:$0xff] }
 0x10a   : > { %2025 = vmatpush1.bf16.msra.mxu0 %v3362_v17  ;;  %2148 = vmatpush1.bf16.msra.mxu1 %v3365_v18  ;;  %v2188_v17 = vld [vmem:[%s3978_s19 + $0x8] sm:$0xff]  ;;  %v3045_v18 = vpack.c.bf16 %v2204_v10, %v2203_v9  ;;  %v2245_v9 = vld [vmem:[%s3978_s19 + $0x1d0] sm:$0xff]  ;;  %v2246_v10 = vld [vmem:[%s3978_s19 + $0x1d8] sm:$0xff] }
 0x10b   : > { %2026 = vmatprep.subr.bf16.mxu0 %v3370_v19  ;;  %2149 = vmatprep.subr.bf16.mxu1 %v3373_v20  ;;  %v3077_v19 = vpack.c.bf16 %v2236_v12, %v2235_v11  ;;  %v2219_v20 = vld [vmem:[%s3978_s19 + $0x100] sm:$0xff] }
 0x10e   : > { %2027 = vmatpush1.bf16.msra.mxu0 %v3368_v21  ;;  %2150 = vmatpush1.bf16.msra.mxu1 %v3371_v22  ;;  %v2220_v21 = vld [vmem:[%s3978_s19 + $0x108] sm:$0xff]  ;;  %v2205_v22 = vld [vmem:[%s3978_s19 + $0x90] sm:$0xff] }
 0x10f   : > { %2028 = vmatprep.subr.bf16.mxu0 %v3376_v23  ;;  %2151 = vmatprep.subr.bf16.mxu1 %v3379_v24  ;;  %v2206_v23 = vld [vmem:[%s3978_s19 + $0x98] sm:$0xff]  ;;  %v2237_v24 = vld [vmem:[%s3978_s19 + $0x190] sm:$0xff] }
 0x112   : > { %2029 = vmatpush1.bf16.msra.mxu0 %v3374_v25  ;;  %2152 = vmatpush1.bf16.msra.mxu1 %v3377_v26  ;;  %v2238_v25 = vld [vmem:[%s3978_s19 + $0x198] sm:$0xff]  ;;  %v786_v26 = vpack.c.bf16 %v780_v15, %v780_v15 }
 0x113   : > { %2030 = vmatprep.subr.bf16.mxu0 %v3382_v27  ;;  %2153 = vmatprep.subr.bf16.mxu1 %v3385_v28  ;;  %v3047_v27 = vpack.c.bf16 %v2188_v17, %v2187_v16  ;;  %v3079_v28 = vpack.c.bf16 %v2220_v21, %v2219_v20  ;;  %v3097_v16 = vpack.c.bf16 %v2246_v10, %v2245_v9  ;;  %v2229_v17 = vld [vmem:[%s3978_s19 + $0x150] sm:$0xff]  ;;  %v2216_v20 = vld [vmem:[%s3978_s19 + $0xe8] sm:$0xff]  ;;  %v2247_v21 = vld [vmem:[%s3978_s19 + $0x1e0] sm:$0xff] }
 0x116   : > { %2031 = vmatpush1.bf16.msra.mxu0 %v3380_v29  ;;  %2154 = vmatpush1.bf16.msra.mxu1 %v3383_v30  ;;  %v2189_v29 = vld [vmem:[%s3978_s19 + $0x10] sm:$0xff]  ;;  %v2190_v30 = vld [vmem:[%s3978_s19 + $0x18] sm:$0xff] }
 0x117   : > { %2032 = vmatprep.subr.bf16.mxu0 %v3388_v31  ;;  %2155 = vmatprep.subr.bf16.mxu1 %v3391_v32  ;;  %v3049_v31 = vpack.c.bf16 %v2206_v23, %v2205_v22  ;;  %v3081_v32 = vpack.c.bf16 %v2238_v25, %v2237_v24  ;;  %v2248_v22 = vld [vmem:[%s3978_s19 + $0x1e8] sm:$0xff]  ;;  %v2199_v25 = vld [vmem:[%s3978_s19 + $0x60] sm:$0xff] }
 0x11a   : > { %2033 = vmatpush1.bf16.msra.mxu0 %v3386_v33  ;;  %2156 = vmatpush1.bf16.msra.mxu1 %v3389_v34  ;;  %v2221_v33 = vld [vmem:[%s3978_s19 + $0x110] sm:$0xff]  ;;  %v2222_v34 = vld [vmem:[%s3978_s19 + $0x118] sm:$0xff] }
 0x11b   : > { %2034 = vmatprep.subr.bf16.mxu0 %v3394_v35  ;;  %2157 = vmatprep.subr.bf16.mxu1 %v3397_v36  ;;  %v2207_v35 = vld [vmem:[%s3978_s19 + $0xa0] sm:$0xff]  ;;  %v2208_v36 = vld [vmem:[%s3978_s19 + $0xa8] sm:$0xff] }
 0x11e   : > { %2035 = vmatpush1.bf16.msra.mxu0 %v3392_v37  ;;  %2158 = vmatpush1.bf16.msra.mxu1 %v3395_v38  ;;  %v2239_v37 = vld [vmem:[%s3978_s19 + $0x1a0] sm:$0xff]  ;;  %v2240_v38 = vld [vmem:[%s3978_s19 + $0x1a8] sm:$0xff] }
 0x11f   : > { %2036 = vmatprep.subr.bf16.mxu0 %v3400_v39  ;;  %2159 = vmatprep.subr.bf16.mxu1 %v3403_v40  ;;  %v3051_v39 = vpack.c.bf16 %v2190_v30, %v2189_v29  ;;  %v3083_v40 = vpack.c.bf16 %v2222_v34, %v2221_v33  ;;  %v2231_v29 = vld [vmem:[%s3978_s19 + $0x160] sm:$0xff]  ;;  %v2232_v30 = vld [vmem:[%s3978_s19 + $0x168] sm:$0xff]  ;;  %v2249_v33 = vld [vmem:[%s3978_s19 + $0x1f0] sm:$0xff] }
 0x120   : > { %v2250_v34 = vld [vmem:[%s3978_s19 + $0x1f8] sm:$0xff] }
 0x122   : > { %2037 = vmatpush1.bf16.msra.mxu0 %v3398_v41  ;;  %2160 = vmatpush1.bf16.msra.mxu1 %v3401_v42  ;;  %v2191_v41 = vld [vmem:[%s3978_s19 + $0x20] sm:$0xff]  ;;  %v2192_v42 = vld [vmem:[%s3978_s19 + $0x28] sm:$0xff] }
 0x123   : > { %2038 = vmatprep.subr.bf16.mxu0 %v3406_v43  ;;  %2161 = vmatprep.subr.bf16.mxu1 %v3409_v44  ;;  %v3053_v43 = vpack.c.bf16 %v2208_v36, %v2207_v35  ;;  %v3085_v44 = vpack.c.bf16 %v2240_v38, %v2239_v37  ;;  %v3103_v36 = vpack.c.bf16 %v2232_v30, %v2231_v29  ;;  %v2934_v29 = vld [vmem:[%s4316_s7] ss:$0 sm:$0xff] (!%p2928_p10) }
 0x124   : > { %v3105_v38 = vpack.c.bf16 %v2250_v34, %v2249_v33 }
 0x126   : > { %2039 = vmatpush1.bf16.msra.mxu0 %v3404_v45  ;;  %2162 = vmatpush1.bf16.msra.mxu1 %v3407_v46  ;;  %v2223_v45 = vld [vmem:[%s3978_s19 + $0x120] sm:$0xff]  ;;  %v2224_v46 = vld [vmem:[%s3978_s19 + $0x128] sm:$0xff] }
 0x127   : > { %2040 = vmatprep.subr.bf16.mxu0 %v3412_v47  ;;  %2163 = vmatprep.subr.bf16.mxu1 %v3415_v48  ;;  %v2209_v47 = vld [vmem:[%s3978_s19 + $0xb0] sm:$0xff]  ;;  %v2210_v48 = vld [vmem:[%s3978_s19 + $0xb8] sm:$0xff] }
 0x12a   : > { %2041 = vmatpush1.bf16.msra.mxu0 %v3410_v49  ;;  %2164 = vmatpush1.bf16.msra.mxu1 %v3413_v50  ;;  %v2241_v49 = vld [vmem:[%s3978_s19 + $0x1b0] sm:$0xff]  ;;  %v2242_v50 = vld [vmem:[%s3978_s19 + $0x1b8] sm:$0xff] }
 0x12b   : > { %2042 = vmatprep.subr.bf16.mxu0 %v3418_v51  ;;  %2165 = vmatprep.subr.bf16.mxu1 %v3421_v52  ;;  %v3055_v51 = vpack.c.bf16 %v2192_v42, %v2191_v41  ;;  %v3087_v52 = vpack.c.bf16 %v2224_v46, %v2223_v45  ;;  %v2233_v41 = vld [vmem:[%s3978_s19 + $0x170] sm:$0xff] }
 0x12e   : > { %2043 = vmatpush1.bf16.msra.mxu0 %v3416_v53  ;;  %2166 = vmatpush1.bf16.msra.mxu1 %v3419_v54  ;;  %v2193_v53 = vld [vmem:[%s3978_s19 + $0x30] sm:$0xff]  ;;  %v2194_v54 = vld [vmem:[%s3978_s19 + $0x38] sm:$0xff] }
 0x12f   : > { %2044 = vmatprep.subr.bf16.mxu0 %v3424_v55  ;;  %2167 = vmatprep.subr.bf16.mxu1 %v3427_v56  ;;  %v3057_v55 = vpack.c.bf16 %v2210_v48, %v2209_v47  ;;  %v3089_v56 = vpack.c.bf16 %v2242_v50, %v2241_v49 }
 0x132   : > { %2045 = vmatpush1.bf16.msra.mxu0 %v3422_v57  ;;  %2168 = vmatpush1.bf16.msra.mxu1 %v3425_v58  ;;  %v2225_v57 = vld [vmem:[%s3978_s19 + $0x130] sm:$0xff]  ;;  %v2226_v58 = vld [vmem:[%s3978_s19 + $0x138] sm:$0xff] }
 0x133   : > { %2046 = vmatprep.subr.bf16.mxu0 %v3430_v59  ;;  %2169 = vmatprep.subr.bf16.mxu1 %v3433_v60  ;;  %v2211_v59 = vld [vmem:[%s3978_s19 + $0xc0] sm:$0xff]  ;;  %v2212_v60 = vld [vmem:[%s3978_s19 + $0xc8] sm:$0xff] }
 0x136   : > { %2047 = vmatpush1.bf16.msra.mxu0 %v3428_v61  ;;  %2170 = vmatpush1.bf16.msra.mxu1 %v3431_v62  ;;  %v2243_v61 = vld [vmem:[%s3978_s19 + $0x1c0] sm:$0xff]  ;;  %v2244_v62 = vld [vmem:[%s3978_s19 + $0x1c8] sm:$0xff] }
 0x137   : > { %2048 = vmatprep.subr.bf16.mxu0 %v3436_v63  ;;  %2171 = vmatprep.subr.bf16.mxu1 %v3439_v0  ;;  %v3059_v63 = vpack.c.bf16 %v2194_v54, %v2193_v53  ;;  %v3091_v0 = vpack.c.bf16 %v2226_v58, %v2225_v57 }
 0x13a   : > { %2049 = vmatpush1.bf16.msra.mxu0 %v3434_v1  ;;  %2172 = vmatpush1.bf16.msra.mxu1 %v3437_v2  ;;  %v2195_v1 = vld [vmem:[%s3978_s19 + $0x40] sm:$0xff]  ;;  %v2196_v2 = vld [vmem:[%s3978_s19 + $0x48] sm:$0xff] }
 0x13b   : > { %2050 = vmatprep.subr.bf16.mxu0 %v3442_v3  ;;  %2173 = vmatprep.subr.bf16.mxu1 %v3445_v4  ;;  %v3061_v3 = vpack.c.bf16 %v2212_v60, %v2211_v59  ;;  %v3093_v4 = vpack.c.bf16 %v2244_v62, %v2243_v61  ;;  %v3063_v11 = vpack.c.bf16 %v2196_v2, %v2195_v1  ;;  %v2186_v59 = vld [vmem:[#allocation2] sm:$0xff]  ;;  %v3489_v1 = vmov (!%p2928_p10), 0.0|0.0  }
 0x13c   : > { %v2415_v62 = vld [vmem:[%s4313_s4] sm:$0xff] (!%p2928_p10) }
 0x13e   : > { %2051 = vmatpush1.bf16.msra.mxu0 %v3440_v5  ;;  %2174 = vmatpush1.bf16.msra.mxu1 %v3443_v6  ;;  %v2227_v5 = vld [vmem:[%s3978_s19 + $0x140] sm:$0xff]  ;;  %v2228_v6 = vld [vmem:[%s3978_s19 + $0x148] sm:$0xff] }
 0x13f   : > { %2052 = vmatprep.subr.bf16.mxu0 %v3448_v7  ;;  %2175 = vmatprep.subr.bf16.mxu1 %v3451_v8  ;;  %v2213_v7 = vld [vmem:[%s3978_s19 + $0xd0] sm:$0xff]  ;;  %v2214_v8 = vld [vmem:[%s3978_s19 + $0xd8] sm:$0xff]  ;;  %v3095_v12 = vpack.c.bf16 %v2228_v6, %v2227_v5  ;;  %v2929_v6 = vld [vmem:[%s4312_s3] ss:$0 sm:$0xff] (!%p2928_p10) }
 0x140   : > { %v3065_v15 = vpack.c.bf16 %v2214_v8, %v2213_v7 }
 0x142   : > { %2053 = vmatpush1.bf16.msra.mxu0 %v3446_v13  ;;  %2176 = vmatpush1.bf16.msra.mxu1 %v3449_v14  ;;  %v2197_v13 = vld [vmem:[%s3978_s19 + $0x50] sm:$0xff]  ;;  %v2198_v14 = vld [vmem:[%s3978_s19 + $0x58] sm:$0xff] }
 0x143   : > { %3046 = vmatprep.subr.bf16.mxu0 %v3045_v18  ;;  %3078 = vmatprep.subr.bf16.mxu1 %v3077_v19  ;;  %v2230_v18 = vld [vmem:[%s3978_s19 + $0x158] sm:$0xff]  ;;  %v2215_v19 = vld [vmem:[%s3978_s19 + $0xe0] sm:$0xff]  ;;  %v3067_v23 = vpack.c.bf16 %v2198_v14, %v2197_v13 }
 0x144   : > { %v3099_v24 = vpack.c.bf16 %v2230_v18, %v2229_v17  ;;  %v2931_v18 = vld [vmem:[%s4314_s5] ss:$0 sm:$0xff] (!%p2928_p10) }
 0x145   : > { %2055 = vmatmul.mubr.bf16.vlgmr.msra.gmra.mrb[0].mxu0 %v786_v26  ;;  %2178 = vmatmul.mubr.bf16.vlgmr.msra.gmra.mrb[0].mxu1 %v786_v26  ;;  %v2200_v26 = vld [vmem:[%s3978_s19 + $0x68] sm:$0xff] }
 0x146   : > { %3048 = vmatpush3.bf16.msra.mxu0 %v3047_v27  ;;  %3080 = vmatpush3.bf16.msra.mxu1 %v3079_v28  ;;  %v3069_v27 = vpack.c.bf16 %v2216_v20, %v2215_v19  ;;  %v3101_v28 = vpack.c.bf16 %v2248_v22, %v2247_v21  ;;  %v3071_v35 = vpack.c.bf16 %v2200_v26, %v2199_v25 }
 0x147   : > { %3050 = vmatprep.subr.bf16.mxu0 %v3049_v31  ;;  %3082 = vmatprep.subr.bf16.mxu1 %v3081_v32  ;;  %v2217_v31 = vld [vmem:[%s3978_s19 + $0xf0] sm:$0xff]  ;;  %v2218_v32 = vld [vmem:[%s3978_s19 + $0xf8] sm:$0xff] }
 0x148   : > { %v3073_v37 = vpack.c.bf16 %v2218_v32, %v2217_v31 }
 0x14a   : > { %3052 = vmatpush3.bf16.msra.mxu0 %v3051_v39  ;;  %3084 = vmatpush3.bf16.msra.mxu1 %v3083_v40  ;;  %v2201_v39 = vld [vmem:[%s3978_s19 + $0x70] sm:$0xff]  ;;  %v2202_v40 = vld [vmem:[%s3978_s19 + $0x78] sm:$0xff] }
 0x14b   : > { %3054 = vmatprep.subr.bf16.mxu0 %v3053_v43  ;;  %3086 = vmatprep.subr.bf16.mxu1 %v3085_v44  ;;  %v3075_v42 = vpack.c.bf16 %v2202_v40, %v2201_v39  ;;  %v2234_v43 = vld [vmem:[%s3978_s19 + $0x178] sm:$0xff]  ;;  %v2937_v39 = vld [vmem:[%s4318_s9] ss:$0 sm:$0xff] (!%p2928_p10) }
 0x14c   : > { %v3107_v44 = vpack.c.bf16 %v2234_v43, %v2233_v41 }
 0x14e   : > { %3056 = vmatpush3.bf16.msra.mxu0 %v3055_v51  ;;  %3088 = vmatpush3.bf16.msra.mxu1 %v3087_v52 }
 0x14f   : > { %3058 = vmatprep.subr.bf16.mxu0 %v3057_v55  ;;  %3090 = vmatprep.subr.bf16.mxu1 %v3089_v56 }
 0x152   : > { %3060 = vmatpush3.bf16.msra.mxu0 %v3059_v63  ;;  %3092 = vmatpush3.bf16.msra.mxu1 %v3091_v0  ;;  %v2416_v63 = vld [vmem:[%s4313_s4 + $0x8] sm:$0xff] (!%p2928_p10)  ;;  %v2417_v0 = vld [vmem:[%s4313_s4 + $0x10] sm:$0xff] (!%p2928_p10) }
 0x153   : > { %3062 = vmatprep.subr.bf16.mxu0 %v3061_v3  ;;  %3094 = vmatprep.subr.bf16.mxu1 %v3093_v4  ;;  %v3110_v2 = vpack.c.bf16 (!%p2928_p10), %v2416_v63, %v2415_v62  ;;  %v2418_v3 = vld [vmem:[%s4313_s4 + $0x18] sm:$0xff] (!%p2928_p10)  ;;  %v3491_v4 = vmov (!%p2928_p10), 0.0  }
 0x154   : > { %v3113_v8 = vpack.c.bf16 (!%p2928_p10), %v2418_v3, %v2417_v0 }
 0x156   : > { %3064 = vmatpush3.bf16.msra.mxu0 %v3063_v11  ;;  %3096 = vmatpush3.bf16.msra.mxu1 %v3095_v12 }
 0x157   : > { %3066 = vmatprep.subr.bf16.mxu0 %v3065_v15  ;;  %3098 = vmatprep.subr.bf16.mxu1 %v3097_v16  ;;  %v2507_v15 = vld [vmem:[%s4315_s6] sm:$0xff] (!%p2928_p10)  ;;  %v2508_v16 = vld [vmem:[%s4315_s6 + $0x8] sm:$0xff] (!%p2928_p10) }
 0x158   : > { %v3116_v17 = vpack.c.bf16 (!%p2928_p10), %v2508_v16, %v2507_v15 }
 0x15a   : > { %3068 = vmatpush3.bf16.msra.mxu0 %v3067_v23  ;;  %3100 = vmatpush3.bf16.msra.mxu1 %v3099_v24 }
 0x15b   : > { %3070 = vmatprep.subr.bf16.mxu0 %v3069_v27  ;;  %3102 = vmatprep.subr.bf16.mxu1 %v3101_v28  ;;  %v2598_v28 = vld [vmem:[%s4317_s8] sm:$0xff] (!%p2928_p10) }
 0x15e   : > { %3072 = vmatpush3.bf16.msra.mxu0 %v3071_v35  ;;  %3104 = vmatpush3.bf16.msra.mxu1 %v3103_v36 }
 0x15f   : > { %3074 = vmatprep.subr.bf16.mxu0 %v3073_v37  ;;  %3106 = vmatprep.subr.bf16.mxu1 %v3105_v38 }
 0x162   : > { %3076 = vmatpush3.bf16.msra.mxu0 %v3075_v42  ;;  %3108 = vmatpush3.bf16.msra.mxu1 %v3107_v44 }
 0x163   : > { %3109 = vmatprep.subr.bf16.mxu0 (!%p2928_p10), %v3489_v1  ;;  %3115 = vmatprep.subr.bf16.mxu1 (!%p2928_p10), %v3489_v1 }
 0x218   : > { %v2056_v45 = vpop.f32.mrb[0].mxu0  ;;  %v2179_v46 = vpop.f32.mrb[0].mxu1 }
 0x219   : > { %v2058_v47 = vpop.f32.mrb[1].mxu0  ;;  %v2181_v48 = vpop.f32.mrb[1].mxu1 }
 0x21a   : > { %v2060_v49 = vpop.f32.mrb[2].mxu0  ;;  %v2183_v50 = vpop.f32.mrb[2].mxu1  ;;  %2315 = vmatprep.mubr.f32.mxu0 %v2058_v47  ;;  %2385 = vmatprep.mubr.f32.mxu1 %v2181_v48 }
 0x21b   : > { %v2061_v51 = vpop.f32.mrb[3].mxu0  ;;  %v2184_v52 = vpop.f32.mrb[3].mxu1  ;;  %2316 = vmatmul.mubr.f32.vlgmr.msra.gmra.mrb[4].mxu0 %v2056_v45  ;;  %2386 = vmatmul.mubr.f32.vlgmr.msra.gmra.mrb[4].mxu1 %v2179_v46 }
 0x21c   : > { %3030 = vmatprep.mubr.msk.f32.mxu0 (!%p2928_p10), %vm3490_vm2, %v3491_v4  ;;  %3037 = vmatprep.mubr.msk.f32.mxu1 (!%p2928_p10), %vm3490_vm2, %v3491_v4 }
 0x21d   : > { %3111 = vmatpush3.bf16.msra.mxu0 (!%p2928_p10), %v3110_v2  ;;  %3117 = vmatpush3.bf16.msra.mxu1 (!%p2928_p10), %v3116_v17 }
 0x21e   : > { %3112 = vmatprep.subr.bf16.mxu0 (!%p2928_p10), %v3489_v1  ;;  %3040 = vmatprep.subr.mxu1 (!%p2928_p10), %v3491_v4 }
 0x221   : > { %3114 = vmatpush3.bf16.msra.mxu0 (!%p2928_p10), %v3113_v8 }
 0x2ee   : > { %v2974_v53 = vpop.f32.mrb[4].mxu0  ;;  %v3009_v54 = vpop.f32.mrb[4].mxu1 }
 0x2ef   : > { %v2975_v55 = vpop.f32.mrb[5].mxu0  ;;  %v3010_v56 = vpop.f32.mrb[5].mxu1 }
 0x2f0   : > { %v2976_v57 = vadd.f32 %v2975_v55, %v2974_v53  ;;  %v3011_v58 = vadd.f32 %v3010_v56, %v3009_v54  ;;  %2397 = sbr.rel (%p2928_p10) target bundleno = 1501 (0x5dd), region = 91 }
 0x2f2   : > { %v2388_v60 = vadd.f32 %v3011_v58, %v2976_v57 }
 0x2f4   : > { %v2391_v61 = vadd.f32 %v2388_v60, %v2186_v59 }
 0x2f6   : > { %2393 = vst.msk [vmem:[#allocation2] sm:$0xff] %vm2392_vm1, %v2391_v61 }
 0x2fd   : > { %v2398_v5 = vld [vmem:[#allocation2] sm:$0xff] }
 0x2fe   : > { %v2406_v7 = vadd.f32 %v2929_v6, %v2398_v5 }
 0x300   : > { %v2930_v9 = vmul.f32 -1.702, %v2406_v7 }
 0x302   : > { %v2409_v10 = vmul.f32 1.442695, %v2930_v9 }
 0x304   : > { %3452 = vpow2.f32 %v2409_v10 }
 0x30e   : > { %v3453_v11 = vpop.eup %3452 }
 0x30f   : > { %v2411_v12 = vadd.f32 1.0, %v3453_v11 }
 0x311   : > { %3454 = vrcp.f32 %v2411_v12 }
 0x31b   : > { %v3455_v13 = vpop.eup %3454 }
 0x31c   : > { %v2414_v14 = vmul.f32 %v3455_v13, %v2406_v7 }
 0x31e   : > { %3031 = vmatmul.mubr.msk.f32.vlgmr.msra.gmra.mrb[0].mxu0 %vm2392_vm1, %v2414_v14 }
 0x3f1   : > { %v2495_v19 = vpop.f32.mrb[0].mxu0 }
 0x3f2   : > { %v2496_v20 = vadd.f32 %v2931_v18, %v2495_v19  ;;  %v3032_v21 = vpop.f32.mrb[1].mxu0 }
 0x3f4   : > { %v2933_v22 = vmul.f32 -1.702, %v2496_v20 }
 0x3f6   : > { %v2501_v23 = vmul.f32 1.442695, %v2933_v22 }
 0x3f8   : > { %3456 = vpow2.f32 %v2501_v23 }
 0x402   : > { %v3457_v24 = vpop.eup %3456 }
 0x403   : > { %v2503_v25 = vadd.f32 1.0, %v3457_v24 }
 0x405   : > { %3458 = vrcp.f32 %v2503_v25 }
 0x40f   : > { %v3459_v26 = vpop.eup %3458 }
 0x410   : > { %v2506_v27 = vmul.f32 %v3459_v26, %v2496_v20 }
 0x412   : > { %3038 = vmatmul.mubr.msk.f32.vlgmr.msra.gmra.mrb[0].mxu1 %vm2516_vm3, %v2506_v27 }
 0x413   : > { %3042 = vmatprep.mubr.msk.f32.mxu1 %vm3490_vm2, %v3491_v4  ;;  %3041 = vmatpush3.msra.mxu1 %v2598_v28 }
 0x4e5   : > { %v2586_v30 = vpop.f32.mrb[0].mxu1 }
 0x4e6   : > { %v2587_v31 = vadd.f32 %v2934_v29, %v2586_v30  ;;  %v3039_v32 = vpop.f32.mrb[1].mxu1 }
 0x4e8   : > { %v2936_v33 = vmul.f32 -1.702, %v2587_v31 }
 0x4ea   : > { %v2592_v34 = vmul.f32 1.442695, %v2936_v33 }
 0x4ec   : > { %3460 = vpow2.f32 %v2592_v34 }
 0x4f6   : > { %v3461_v35 = vpop.eup %3460 }
 0x4f7   : > { %v2594_v36 = vadd.f32 1.0, %v3461_v35 }
 0x4f9   : > { %3462 = vrcp.f32 %v2594_v36 }
 0x503   : > { %v3463_v37 = vpop.eup %3462 }
 0x504   : > { %v2597_v38 = vmul.f32 %v3463_v37, %v2587_v31 }
 0x506   : > { %3043 = vmatmul.mubr.msk.f32.vlgmr.msra.gmra.mrb[2].mxu1 %vm2606_vm4, %v2597_v38 }
 0x5d9   : > { %v2676_v40 = vpop.f32.mrb[2].mxu1 }
 0x5da   : > { %v2677_v41 = vadd.f32 %v2937_v39, %v2676_v40  ;;  %v3044_v42 = vpop.f32.mrb[3].mxu1 }
 0x5dc   : > { %2680 = vst [vmem:[%s4319_s10] sm:$0xff] %v2677_v41 }
 0x5dd PF: > { %p17_p11 = scmp.ge.s32.totalorder %s3566_s17, 4   ;;  %s4320_s13 = smov %s3482_s14 }
 0x5de   : > { %s4321_s14 = smov %s3575_s20  ;;  %s4322_s15 = smov %s3566_s17 }
 0x5df   :  { %19 = sbr.rel (!%p17_p11) target bundleno = 2 (0x2), region = 125 }

</bundles_post_ra>
